<compile_context>
chip_gen: v7x
topology: tpu7x:2x2x1
jax: 0.10.0
libtpu: 0.0.40
codegen_flags: <defaults>
</compile_context>

<pallas_src>
import functools

import jax
import jax.numpy as jnp
from jax.experimental import pallas as pl
from jax.experimental.pallas import tpu as pltpu


# ----------------------------- Pallas kernel --------------------------------
def temporal_sg_kernel(x_ref,
                       w_dw1_ref, s_dw1_ref, b_dw1_ref,
                       w_pw_ref, b_pw_ref,
                       w_dw2_ref, s_dw2_ref, b_dw2_ref,
                       o_ref, *, T, VC, K, pad, block_n, matmul_dtype):
    x = x_ref[...]                                   # (Bb, T, VC) f32; also the residual

    def shift_t(y, d):
        # out[:, t, :] = y[:, t + d, :], zero outside [0, T)  (temporal zero padding)
        if d == 0:
            return y
        zeros = jnp.zeros((block_n, abs(d), VC), y.dtype)
        if d > 0:
            return jnp.concatenate([y[:, d:, :], zeros], axis=1)
        return jnp.concatenate([zeros, y[:, :T + d, :]], axis=1)

    def depthwise(y, w_ref, s_ref, b_ref):
        # K-tap temporal depthwise conv (zero padded) + folded BN scale/shift.
        acc = y * w_ref[pad][None, None, :]          # center tap (d == 0) first
        for k in range(K):                           # static unroll over taps
            d = k - pad
            if d == 0:
                continue
            acc = acc + shift_t(y, d) * w_ref[k][None, None, :]
        scale = s_ref[0][None, None, :]              # hoisted broadcasts
        shift = b_ref[0][None, None, :]
        return acc * scale + shift

    # --- depth_conv1 + BN + ReLU ---------------------------------------------
    y = jnp.maximum(depthwise(x, w_dw1_ref, s_dw1_ref, b_dw1_ref), 0.0)

    # --- fused point_conv1+BN -> point_conv2+BN (single MXU matmul) + ReLU ---
    y2d = y.reshape(block_n * T, VC).astype(matmul_dtype)
    h = jnp.dot(y2d, w_pw_ref[...], preferred_element_type=jnp.float32)
    h = jnp.maximum(h + b_pw_ref[0][None, :], 0.0)
    h = h.reshape(block_n, T, VC)

    # --- depth_conv2 + BN ------------------------------------------------------
    z = depthwise(h, w_dw2_ref, s_dw2_ref, b_dw2_ref)

    # --- identity residual (stride == 1) ---------------------------------------
    o_ref[...] = z + x


# ------------------------------ wrappers --------------------------------------
def temporal_sg_layer_ntvc(x_flat, fp, *, K, pad, block_n=None,
                           matmul_dtype=jnp.float32):
    """x_flat: (N, T, V*C) float32, lane-dense layout. Returns same layout."""
    N, T, VC = x_flat.shape

    if block_n is None:
        # Largest divisor of N that caps the per-step footprint and keeps at least
        # 2 grid steps (so the batch axis shards across TensorCores on v7x).
        block_n = 1
        for cand in range(min(N, 32), 0, -1):
            if N % cand == 0 and N // cand >= min(2, N):
                block_n = cand
                break
    assert N % block_n == 0, (N, block_n)

    kernel = functools.partial(temporal_sg_kernel, T=T, VC=VC, K=K, pad=pad,
                               block_n=block_n, matmul_dtype=matmul_dtype)

    full2 = lambda n: (0, 0)  # whole-array blocks for weights / scales / shifts

    return pl.pallas_call(
        kernel,
        out_shape=jax.ShapeDtypeStruct((N, T, VC), jnp.float32),
        grid_spec=pltpu.PrefetchScalarGridSpec(
            num_scalar_prefetch=0,
            grid=(N // block_n,),
            in_specs=[
                pl.BlockSpec((block_n, T, VC), lambda n: (n, 0, 0)),   # x
                pl.BlockSpec((K, VC), full2),    # w_dw1 (per-channel, lane-tiled)
                pl.BlockSpec((1, VC), full2),    # s_dw1
                pl.BlockSpec((1, VC), full2),    # b_dw1
                pl.BlockSpec((VC, VC), full2),   # fused pointwise weight (block-diag)
                pl.BlockSpec((1, VC), full2),    # fused pointwise bias
                pl.BlockSpec((K, VC), full2),    # w_dw2
                pl.BlockSpec((1, VC), full2),    # s_dw2
                pl.BlockSpec((1, VC), full2),    # b_dw2
            ],
            out_specs=pl.BlockSpec((block_n, T, VC), lambda n: (n, 0, 0)),
        ),
        compiler_params=pltpu.CompilerParams(dimension_semantics=("parallel",)),
    )(x_flat,
      fp["w_dw1"], fp["s_dw1"], fp["b_dw1"],
      fp["w_pw"], fp["b_pw"],
      fp["w_dw2"], fp["s_dw2"], fp["b_dw2"])


def temporal_sg_layer(x_nchw, fp, *, K, pad, **kw):
    """NCHW adapter around the lane-dense kernel.

    In a full network, keep activations in (N, T, V*C) across layers so these
    boundary transposes are paid once at model entry/exit, not per layer."""
    N, C, T, V = x_nchw.shape
    x = jnp.transpose(x_nchw, (0, 2, 3, 1)).reshape(N, T, V * C)
    out = temporal_sg_layer_ntvc(x, fp, K=K, pad=pad, **kw)
    return jnp.transpose(out.reshape(N, T, V, C), (0, 3, 1, 2))


# ----------------------- parameter construction ------------------------------
def make_params(key, C, Ci, K):
    """Raw PyTorch-shaped params (deterministic, synthetic)."""
    ks = jax.random.split(key, 16)
    p = {}
    # depthwise conv weights: (C, 1, K, 1); pointwise: (O, I, 1, 1)
    p["dw1_w"] = jax.random.normal(ks[0], (C, 1, K, 1), jnp.float32) * 0.2
    p["dw1_b"] = jax.random.normal(ks[1], (C,), jnp.float32) * 0.1
    p["pw1_w"] = jax.random.normal(ks[2], (Ci, C, 1, 1), jnp.float32) * 0.1
    p["pw1_b"] = jax.random.normal(ks[3], (Ci,), jnp.float32) * 0.1
    p["pw2_w"] = jax.random.normal(ks[4], (C, Ci, 1, 1), jnp.float32) * 0.1
    p["pw2_b"] = jax.random.normal(ks[5], (C,), jnp.float32) * 0.1
    p["dw2_w"] = jax.random.normal(ks[6], (C, 1, K, 1), jnp.float32) * 0.2
    p["dw2_b"] = jax.random.normal(ks[7], (C,), jnp.float32) * 0.1

    def bn(k, n):
        kg, kb, km, kv = jax.random.split(k, 4)
        gamma = 1.0 + 0.1 * jax.random.normal(kg, (n,), jnp.float32)
        beta = 0.1 * jax.random.normal(kb, (n,), jnp.float32)
        mean = 0.1 * jax.random.normal(km, (n,), jnp.float32)
        var = 0.5 + jax.random.uniform(kv, (n,), jnp.float32)
        return (gamma, beta, mean, var)

    p["dw1_bn"] = bn(ks[8], C)
    p["pw1_bn"] = bn(ks[9], Ci)
    p["pw2_bn"] = bn(ks[10], C)
    p["dw2_bn"] = bn(ks[11], C)
    return p


def fold_params(p, V, eps=1e-5, matmul_dtype=jnp.float32):
    """Fold conv bias + inference-mode BN into per-channel scale/shift, fuse the two
    pointwise convs into one matrix, and tile everything for the (T, V*C) layout."""
    def fold(bn, bias):
        gamma, beta, mean, var = bn
        scale = gamma * jax.lax.rsqrt(var + eps)
        shift = beta - mean * scale + bias * scale
        return scale, shift

    def tile_lane(v):                       # (C,) per-channel -> (1, V*C) lane-dense
        return jnp.tile(v, V).reshape(1, -1)

    fp = {}
    # depthwise temporal convs: (C,1,K,1) -> (K, C) -> lane-tiled (K, V*C)
    s, b = fold(p["dw1_bn"], p["dw1_b"])
    fp["w_dw1"] = jnp.tile(jnp.transpose(p["dw1_w"][:, 0, :, 0], (1, 0)), (1, V))
    fp["s_dw1"], fp["b_dw1"] = tile_lane(s), tile_lane(b)

    s, b = fold(p["dw2_bn"], p["dw2_b"])
    fp["w_dw2"] = jnp.tile(jnp.transpose(p["dw2_w"][:, 0, :, 0], (1, 0)), (1, V))
    fp["s_dw2"], fp["b_dw2"] = tile_lane(s), tile_lane(b)

    # Fuse point_conv1+BN and point_conv2+BN (valid: no activation in between):
    #   h = ((y @ W1) * s1 + b1) @ W2 * s2 + b2
    #     = y @ [((W1 * s1) @ W2) * s2]  +  [(b1 @ W2) * s2 + b2]
    W1 = jnp.transpose(p["pw1_w"][:, :, 0, 0], (1, 0))      # (C, Ci)
    W2 = jnp.transpose(p["pw2_w"][:, :, 0, 0], (1, 0))      # (Ci, C)
    s1, b1 = fold(p["pw1_bn"], p["pw1_b"])                   # (Ci,)
    s2, b2 = fold(p["pw2_bn"], p["pw2_b"])                   # (C,)
    w_fused = ((W1 * s1[None, :]) @ W2) * s2[None, :]        # (C, C)
    b_fused = (b1 @ W2) * s2 + b2                            # (C,)
    # Block-diagonal expansion so the matmul runs in the lane-dense (V*C) layout.
    fp["w_pw"] = jnp.kron(jnp.eye(V, dtype=w_fused.dtype), w_fused).astype(matmul_dtype)
    fp["b_pw"] = tile_lane(b_fused)
    return fp


# ---------------------- plain-JAX reference (NCHW) ----------------------------
def ref_forward(x, p, *, C, pad, eps=1e-5):
    def bn(y, stats):
        g, b, m, v = stats
        inv = (g / jnp.sqrt(v + eps))[None, :, None, None]
        return (y - m[None, :, None, None]) * inv + b[None, :, None, None]

    def dwconv(y, w, bias):
        out = jax.lax.conv_general_dilated(
            y, w, window_strides=(1, 1), padding=((pad, pad), (0, 0)),
            dimension_numbers=("NCHW", "OIHW", "NCHW"), feature_group_count=C)
        return out + bias[None, :, None, None]

    def pwconv(y, w, bias):
        out = jax.lax.conv_general_dilated(
            y, w, window_strides=(1, 1), padding="VALID",
            dimension_numbers=("NCHW", "OIHW", "NCHW"))
        return out + bias[None, :, None, None]

    res = x
    y = jnp.maximum(bn(dwconv(x, p["dw1_w"], p["dw1_b"]), p["dw1_bn"]), 0.0)
    y = bn(pwconv(y, p["pw1_w"], p["pw1_b"]), p["pw1_bn"])
    y = jnp.maximum(bn(pwconv(y, p["pw2_w"], p["pw2_b"]), p["pw2_bn"]), 0.0)
    y = bn(dwconv(y, p["dw2_w"], p["dw2_b"]), p["dw2_bn"])
    return y + res


# --------------------------------- main ---------------------------------------
if __name__ == "__main__":
    # Temporal_SG_Layer(channel=64, temporal_window_size=3, bias=True,
    #                   act=ReLU, reduct_ratio=4, stride=1, residual=True)
    N, C, T, V = 2, 64, 16, 8
    K = 3
    reduct_ratio = 4
    Ci = C // reduct_ratio
    pad = (K - 1) // 2

    key = jax.random.PRNGKey(0)
    kx, kp = jax.random.split(key)
    x = jax.random.normal(kx, (N, C, T, V), jnp.float32)

    raw_params = make_params(kp, C, Ci, K)
    # matmul_dtype=jnp.bfloat16 is the MXU fast path on v6e/v7x; kept f32 here so the
    # result stays within the 1e-4 check against the f32 reference.
    folded = fold_params(raw_params, V=V, matmul_dtype=jnp.float32)

    out = temporal_sg_layer(x, folded, K=K, pad=pad)
    out = jax.block_until_ready(out)

    ref = jax.block_until_ready(ref_forward(x, raw_params, C=C, pad=pad))

    assert out.shape == (N, C, T, V), out.shape
    err = float(jnp.max(jnp.abs(out - ref)))
    assert jnp.allclose(out, ref, atol=1e-4, rtol=1e-4), err
    print("KERNEL_OK")
</pallas_src>

<mosaic_0001>
module attributes {stable_mosaic.version = 11 : i64} {
  func.func @temporal_sg_kernel(%arg0: i32, %arg1: memref<1x16x512xf32, #tpu.memory_space<vmem>>, %arg2: memref<3x512xf32, #tpu.memory_space<vmem>>, %arg3: memref<1x512xf32, #tpu.memory_space<vmem>>, %arg4: memref<1x512xf32, #tpu.memory_space<vmem>>, %arg5: memref<512x512xf32, #tpu.memory_space<vmem>>, %arg6: memref<1x512xf32, #tpu.memory_space<vmem>>, %arg7: memref<3x512xf32, #tpu.memory_space<vmem>>, %arg8: memref<1x512xf32, #tpu.memory_space<vmem>>, %arg9: memref<1x512xf32, #tpu.memory_space<vmem>>, %arg10: memref<1x16x512xf32, #tpu.memory_space<vmem>>) attributes {dimension_semantics = [#tpu.dimension_semantics<parallel>], iteration_bounds = array<i64: 2>, scalar_prefetch = 0 : i64, scratch_operands = 0 : i64, tpu.core_type = #tpu.core_type<tc>, window_params = [{transform_indices = @transform_0, window_bounds = array<i64: 1, 16, 512>}, {pipeline_mode = #tpu.pipeline_mode<synchronous>, transform_indices = @transform_1, window_bounds = array<i64: 3, 512>}, {pipeline_mode = #tpu.pipeline_mode<synchronous>, transform_indices = @transform_2, window_bounds = array<i64: 1, 512>}, {pipeline_mode = #tpu.pipeline_mode<synchronous>, transform_indices = @transform_3, window_bounds = array<i64: 1, 512>}, {pipeline_mode = #tpu.pipeline_mode<synchronous>, transform_indices = @transform_4, window_bounds = array<i64: 512, 512>}, {pipeline_mode = #tpu.pipeline_mode<synchronous>, transform_indices = @transform_5, window_bounds = array<i64: 1, 512>}, {pipeline_mode = #tpu.pipeline_mode<synchronous>, transform_indices = @transform_6, window_bounds = array<i64: 3, 512>}, {pipeline_mode = #tpu.pipeline_mode<synchronous>, transform_indices = @transform_7, window_bounds = array<i64: 1, 512>}, {pipeline_mode = #tpu.pipeline_mode<synchronous>, transform_indices = @transform_8, window_bounds = array<i64: 1, 512>}, {transform_indices = @transform_9, window_bounds = array<i64: 1, 16, 512>}]} {
    %c0 = arith.constant 0 : index
    %c0_0 = arith.constant 0 : index
    %c0_1 = arith.constant 0 : index
    %0 = vector.load %arg1[%c0, %c0_0, %c0_1] : memref<1x16x512xf32, #tpu.memory_space<vmem>>, vector<1x16x512xf32>
    %c1 = arith.constant 1 : index
    %c0_2 = arith.constant 0 : index
    %1 = vector.load %arg2[%c1, %c0_2] : memref<3x512xf32, #tpu.memory_space<vmem>>, vector<1x512xf32>
    %2 = vector.shape_cast %1 : vector<1x512xf32> to vector<512xf32>
    %3 = vector.shape_cast %2 : vector<512xf32> to vector<1x1x512xf32>
    %4 = vector.broadcast %3 : vector<1x1x512xf32> to vector<1x16x512xf32>
    %5 = arith.mulf %0, %4 : vector<1x16x512xf32>
    %cst = arith.constant 0.000000e+00 : f32
    %6 = vector.broadcast %cst : f32 to vector<1x1x512xf32>
    %7 = vector.extract_strided_slice %0 {offsets = [0, 0, 0], sizes = [1, 15, 512], strides = [1, 1, 1]} : vector<1x16x512xf32> to vector<1x15x512xf32>
    %8 = tpu.concatenate %6, %7 in 1 : vector<1x1x512xf32>, vector<1x15x512xf32> -> vector<1x16x512xf32>
    %c0_3 = arith.constant 0 : index
    %c0_4 = arith.constant 0 : index
    %9 = vector.load %arg2[%c0_3, %c0_4] : memref<3x512xf32, #tpu.memory_space<vmem>>, vector<1x512xf32>
    %10 = vector.shape_cast %9 : vector<1x512xf32> to vector<512xf32>
    %11 = vector.shape_cast %10 : vector<512xf32> to vector<1x1x512xf32>
    %12 = vector.broadcast %11 : vector<1x1x512xf32> to vector<1x16x512xf32>
    %13 = arith.mulf %8, %12 : vector<1x16x512xf32>
    %14 = arith.addf %5, %13 : vector<1x16x512xf32>
    %cst_5 = arith.constant 0.000000e+00 : f32
    %15 = vector.broadcast %cst_5 : f32 to vector<1x1x512xf32>
    %16 = vector.extract_strided_slice %0 {offsets = [0, 1, 0], sizes = [1, 15, 512], strides = [1, 1, 1]} : vector<1x16x512xf32> to vector<1x15x512xf32>
    %17 = tpu.concatenate %16, %15 in 1 : vector<1x15x512xf32>, vector<1x1x512xf32> -> vector<1x16x512xf32>
    %c2 = arith.constant 2 : index
    %c0_6 = arith.constant 0 : index
    %18 = vector.load %arg2[%c2, %c0_6] : memref<3x512xf32, #tpu.memory_space<vmem>>, vector<1x512xf32>
    %19 = vector.shape_cast %18 : vector<1x512xf32> to vector<512xf32>
    %20 = vector.shape_cast %19 : vector<512xf32> to vector<1x1x512xf32>
    %21 = vector.broadcast %20 : vector<1x1x512xf32> to vector<1x16x512xf32>
    %22 = arith.mulf %17, %21 : vector<1x16x512xf32>
    %23 = arith.addf %14, %22 : vector<1x16x512xf32>
    %c0_7 = arith.constant 0 : index
    %c0_8 = arith.constant 0 : index
    %24 = vector.load %arg3[%c0_7, %c0_8] : memref<1x512xf32, #tpu.memory_space<vmem>>, vector<1x512xf32>
    %25 = vector.shape_cast %24 : vector<1x512xf32> to vector<512xf32>
    %26 = vector.shape_cast %25 : vector<512xf32> to vector<1x1x512xf32>
    %c0_9 = arith.constant 0 : index
    %c0_10 = arith.constant 0 : index
    %27 = vector.load %arg4[%c0_9, %c0_10] : memref<1x512xf32, #tpu.memory_space<vmem>>, vector<1x512xf32>
    %28 = vector.shape_cast %27 : vector<1x512xf32> to vector<512xf32>
    %29 = vector.shape_cast %28 : vector<512xf32> to vector<1x1x512xf32>
    %30 = vector.broadcast %26 : vector<1x1x512xf32> to vector<1x16x512xf32>
    %31 = arith.mulf %23, %30 : vector<1x16x512xf32>
    %32 = vector.broadcast %29 : vector<1x1x512xf32> to vector<1x16x512xf32>
    %33 = arith.addf %31, %32 : vector<1x16x512xf32>
    %cst_11 = arith.constant 0.000000e+00 : f32
    %34 = vector.broadcast %cst_11 : f32 to vector<1x16x512xf32>
    %35 = arith.maximumf %33, %34 : vector<1x16x512xf32>
    %36 = vector.shape_cast %35 : vector<1x16x512xf32> to vector<16x512xf32>
    %c0_12 = arith.constant 0 : index
    %c0_13 = arith.constant 0 : index
    %37 = vector.load %arg5[%c0_12, %c0_13] : memref<512x512xf32, #tpu.memory_space<vmem>>, vector<512x512xf32>
    %cst_14 = arith.constant dense<0.000000e+00> : vector<16x512xf32>
    %38 = tpu.matmul %36, %37, %cst_14 {dimension_numbers = #tpu.dot_dimension_numbers<[1], [0], [0], [1], [0, 0, 1, 1], [], []>} : vector<16x512xf32>, vector<512x512xf32>, vector<16x512xf32> -> vector<16x512xf32>
    %c0_15 = arith.constant 0 : index
    %c0_16 = arith.constant 0 : index
    %39 = vector.load %arg6[%c0_15, %c0_16] : memref<1x512xf32, #tpu.memory_space<vmem>>, vector<1x512xf32>
    %40 = vector.shape_cast %39 : vector<1x512xf32> to vector<512xf32>
    %41 = vector.shape_cast %40 : vector<512xf32> to vector<1x512xf32>
    %42 = vector.broadcast %41 : vector<1x512xf32> to vector<16x512xf32>
    %43 = arith.addf %38, %42 : vector<16x512xf32>
    %cst_17 = arith.constant 0.000000e+00 : f32
    %44 = vector.broadcast %cst_17 : f32 to vector<16x512xf32>
    %45 = arith.maximumf %43, %44 : vector<16x512xf32>
    %46 = vector.shape_cast %45 : vector<16x512xf32> to vector<1x16x512xf32>
    %c1_18 = arith.constant 1 : index
    %c0_19 = arith.constant 0 : index
    %47 = vector.load %arg7[%c1_18, %c0_19] : memref<3x512xf32, #tpu.memory_space<vmem>>, vector<1x512xf32>
    %48 = vector.shape_cast %47 : vector<1x512xf32> to vector<512xf32>
    %49 = vector.shape_cast %48 : vector<512xf32> to vector<1x1x512xf32>
    %50 = vector.broadcast %49 : vector<1x1x512xf32> to vector<1x16x512xf32>
    %51 = arith.mulf %46, %50 : vector<1x16x512xf32>
    %cst_20 = arith.constant 0.000000e+00 : f32
    %52 = vector.broadcast %cst_20 : f32 to vector<1x1x512xf32>
    %53 = vector.extract_strided_slice %46 {offsets = [0, 0, 0], sizes = [1, 15, 512], strides = [1, 1, 1]} : vector<1x16x512xf32> to vector<1x15x512xf32>
    %54 = tpu.concatenate %52, %53 in 1 : vector<1x1x512xf32>, vector<1x15x512xf32> -> vector<1x16x512xf32>
    %c0_21 = arith.constant 0 : index
    %c0_22 = arith.constant 0 : index
    %55 = vector.load %arg7[%c0_21, %c0_22] : memref<3x512xf32, #tpu.memory_space<vmem>>, vector<1x512xf32>
    %56 = vector.shape_cast %55 : vector<1x512xf32> to vector<512xf32>
    %57 = vector.shape_cast %56 : vector<512xf32> to vector<1x1x512xf32>
    %58 = vector.broadcast %57 : vector<1x1x512xf32> to vector<1x16x512xf32>
    %59 = arith.mulf %54, %58 : vector<1x16x512xf32>
    %60 = arith.addf %51, %59 : vector<1x16x512xf32>
    %cst_23 = arith.constant 0.000000e+00 : f32
    %61 = vector.broadcast %cst_23 : f32 to vector<1x1x512xf32>
    %62 = vector.extract_strided_slice %46 {offsets = [0, 1, 0], sizes = [1, 15, 512], strides = [1, 1, 1]} : vector<1x16x512xf32> to vector<1x15x512xf32>
    %63 = tpu.concatenate %62, %61 in 1 : vector<1x15x512xf32>, vector<1x1x512xf32> -> vector<1x16x512xf32>
    %c2_24 = arith.constant 2 : index
    %c0_25 = arith.constant 0 : index
    %64 = vector.load %arg7[%c2_24, %c0_25] : memref<3x512xf32, #tpu.memory_space<vmem>>, vector<1x512xf32>
    %65 = vector.shape_cast %64 : vector<1x512xf32> to vector<512xf32>
    %66 = vector.shape_cast %65 : vector<512xf32> to vector<1x1x512xf32>
    %67 = vector.broadcast %66 : vector<1x1x512xf32> to vector<1x16x512xf32>
    %68 = arith.mulf %63, %67 : vector<1x16x512xf32>
    %69 = arith.addf %60, %68 : vector<1x16x512xf32>
    %c0_26 = arith.constant 0 : index
    %c0_27 = arith.constant 0 : index
    %70 = vector.load %arg8[%c0_26, %c0_27] : memref<1x512xf32, #tpu.memory_space<vmem>>, vector<1x512xf32>
    %71 = vector.shape_cast %70 : vector<1x512xf32> to vector<512xf32>
    %72 = vector.shape_cast %71 : vector<512xf32> to vector<1x1x512xf32>
    %c0_28 = arith.constant 0 : index
    %c0_29 = arith.constant 0 : index
    %73 = vector.load %arg9[%c0_28, %c0_29] : memref<1x512xf32, #tpu.memory_space<vmem>>, vector<1x512xf32>
    %74 = vector.shape_cast %73 : vector<1x512xf32> to vector<512xf32>
    %75 = vector.shape_cast %74 : vector<512xf32> to vector<1x1x512xf32>
    %76 = vector.broadcast %72 : vector<1x1x512xf32> to vector<1x16x512xf32>
    %77 = arith.mulf %69, %76 : vector<1x16x512xf32>
    %78 = vector.broadcast %75 : vector<1x1x512xf32> to vector<1x16x512xf32>
    %79 = arith.addf %77, %78 : vector<1x16x512xf32>
    %80 = arith.addf %79, %0 : vector<1x16x512xf32>
    %c0_30 = arith.constant 0 : index
    %c0_31 = arith.constant 0 : index
    %c0_32 = arith.constant 0 : index
    %81 = vector.load %arg10[%c0_30, %c0_31, %c0_32] : memref<1x16x512xf32, #tpu.memory_space<vmem>>, vector<1x16x512xf32>
    tpu.vector_store %arg10[%c0_30, %c0_31, %c0_32], %80 {strides = array<i32>} : memref<1x16x512xf32, #tpu.memory_space<vmem>>, vector<1x16x512xf32>,
    return
  }
  func.func @transform_0(%arg0: i32) -> (i32, i32, i32) {
    %c0_i32 = arith.constant 0 : i32
    %c0_i32_0 = arith.constant 0 : i32
    %c0_i32_1 = arith.constant 0 : i32
    return %arg0, %c0_i32, %c0_i32_0 : i32, i32, i32
  }
  func.func @transform_1(%arg0: i32) -> (i32, i32) {
    %c0_i32 = arith.constant 0 : i32
    %c0_i32_0 = arith.constant 0 : i32
    %c0_i32_1 = arith.constant 0 : i32
    return %c0_i32, %c0_i32_0 : i32, i32
  }
  func.func @transform_2(%arg0: i32) -> (i32, i32) {
    %c0_i32 = arith.constant 0 : i32
    %c0_i32_0 = arith.constant 0 : i32
    %c0_i32_1 = arith.constant 0 : i32
    return %c0_i32, %c0_i32_0 : i32, i32
  }
  func.func @transform_3(%arg0: i32) -> (i32, i32) {
    %c0_i32 = arith.constant 0 : i32
    %c0_i32_0 = arith.constant 0 : i32
    %c0_i32_1 = arith.constant 0 : i32
    return %c0_i32, %c0_i32_0 : i32, i32
  }
  func.func @transform_4(%arg0: i32) -> (i32, i32) {
    %c0_i32 = arith.constant 0 : i32
    %c0_i32_0 = arith.constant 0 : i32
    %c0_i32_1 = arith.constant 0 : i32
    return %c0_i32, %c0_i32_0 : i32, i32
  }
  func.func @transform_5(%arg0: i32) -> (i32, i32) {
    %c0_i32 = arith.constant 0 : i32
    %c0_i32_0 = arith.constant 0 : i32
    %c0_i32_1 = arith.constant 0 : i32
    return %c0_i32, %c0_i32_0 : i32, i32
  }
  func.func @transform_6(%arg0: i32) -> (i32, i32) {
    %c0_i32 = arith.constant 0 : i32
    %c0_i32_0 = arith.constant 0 : i32
    %c0_i32_1 = arith.constant 0 : i32
    return %c0_i32, %c0_i32_0 : i32, i32
  }
  func.func @transform_7(%arg0: i32) -> (i32, i32) {
    %c0_i32 = arith.constant 0 : i32
    %c0_i32_0 = arith.constant 0 : i32
    %c0_i32_1 = arith.constant 0 : i32
    return %c0_i32, %c0_i32_0 : i32, i32
  }
  func.func @transform_8(%arg0: i32) -> (i32, i32) {
    %c0_i32 = arith.constant 0 : i32
    %c0_i32_0 = arith.constant 0 : i32
    %c0_i32_1 = arith.constant 0 : i32
    return %c0_i32, %c0_i32_0 : i32, i32
  }
  func.func @transform_9(%arg0: i32) -> (i32, i32, i32) {
    %c0_i32 = arith.constant 0 : i32
    %c0_i32_0 = arith.constant 0 : i32
    %c0_i32_1 = arith.constant 0 : i32
    return %arg0, %c0_i32, %c0_i32_0 : i32, i32, i32
  }
}

</mosaic_0001>

<bundles_post_ra>
// kernel: tpu_custom_call.1
= control target key start
LH: loop header
LB: loop body
LE: loop exit
PB: predicated region body
PF: predicated region fallthrough
CT: control target
= control target key end

     0   :  { %s2982_s0 = inlined_call_operand.hbm [shape: f32[2,16,512], index: 0, kind: input, shape index: {}]   ;;  %s2983_s1 = inlined_call_operand.hbm [shape: f32[3,512], index: 1, kind: input, shape index: {}]   ;;  %s2984_s2 = inlined_call_operand.vmem [shape: f32[1,512], index: 2, kind: input, shape index: {}]   ;;  %s2985_s3 = inlined_call_operand.hbm [shape: f32[1,512], index: 3, kind: input, shape index: {}]   ;;  %s2986_s4 = inlined_call_operand.hbm [shape: f32[512,512], index: 4, kind: input, shape index: {}]   ;;  %s2987_s5 = inlined_call_operand.hbm [shape: f32[1,512], index: 5, kind: input, shape index: {}]   ;;  %s2988_s6 = inlined_call_operand.vmem [shape: f32[3,512], index: 6, kind: input, shape index: {}]   ;;  %s2989_s7 = inlined_call_operand.vmem [shape: f32[1,512], index: 7, kind: input, shape index: {}]   ;;  %s2990_s8 = inlined_call_operand.vmem [shape: f32[1,512], index: 8, kind: input, shape index: {}]   ;;  %s2991_s9 = inlined_call_operand.hbm [shape: f32[2,16,512], index: 9, kind: output, shape index: {}]  }
   0x1   :  { %2997 = sst [smem:[#allocation17_spill]] %s2983_s1 }
   0x2   :  { %14 = vsyncpa [#allocation3], 0 }
   0x3   :  { %16 = vsyncpa [#allocation3 + $0x1], 0 }
   0x4   :  { %17 = vsyncpa [#allocation6], 0 }
   0x5   :  { %18 = vsyncpa [#allocation9], 0 }
   0x6   :  { %19 = vsyncpa [#allocation4], 0 }
   0x7   :  { %21 = vsyncpa [#allocation4 + $0x1], 0  ;;  %s2275_s30 = smov 0   ;;  %s2277_s10 = smov 0  }
   0x8   :  { %s2279_s11 = smov 0   ;;  %s2281_s12 = smov 0  }
   0x9 LB: > { %s2296_s13 = sadd.s32 4294967295, %s2213_s12   ;;  %s1604_s14 = sadd.s32 4294967294, %s2213_s12   ;;  %s2213_s12 = sphi %s2281_s12, %s3021_s12   ;;  %s2209_s11 = sphi %s2279_s11, %s3020_s11   ;;  %s2205_s10 = sphi %s2277_s10, %s3019_s10   ;;  %s2201_s30 = sphi %s2275_s30, %s3018_s30  }
   0xa   : > { %p47_p0 = scmp.ne.s32.totalorder %s2205_s10, %s2201_s30  ;;  %p2992_p1 = scmp.eq.s32.totalorder %s2296_s13, 0 }
   0xb   : > { %p245_p3 = scmp.eq.s32.totalorder %s1604_s14, 1  ;;  %p1605_p5 = scmp.ge.s32.totalorder %s2213_s12, 1 }
   0xc   : > { %p2305_p4 = por %p2992_p1, %p47_p0  ;;  %p252_p7 = scmp.lt.s32.totalorder %s2213_s12, 3 }
   0xd   : > { %p2310_p6 = por %p245_p3, %p47_p0  ;;  %s2215_s18 = smov [#allocation5]  }
   0xe   : > { %s2998_s15 = scalar_select %p2305_p4, 1, 0 }
   0xf   : > { %s2999_s16 = scalar_select %p2310_p6, 1, 0 }
  0x10   : > { %p2315_p8 = pnand %p1605_p5, %p252_p7  ;;  %s265_s19 = sshll.u32 %s2215_s18, 4  ;;  %s266_s19 = int_to_ptr.vmem [resolvable:$true] %s265_s19 }
  0x11   : > { %3000 = sst [smem:[#allocation16_spill]] %s2999_s16  ;;  %s2216_s20 = smov [#allocation8]  }
  0x12   : > { %s3001_s17 = scalar_select %p2315_p8, 1, 0 }
  0x13   : > { %p1922_p10 = pneg %p2315_p8  ;;  %s289_s21 = sshll.u32 %s2216_s20, 4  ;;  %s2328_s21 = int_to_ptr.vmem [resolvable:$true] %s289_s21 }
  0x14   : > { %s2217_s23 = smov [#allocation7]   ;;  %s3003_s1 = sld [smem:[#allocation17_spill]] }
  0x15   : > { %p2324_p11 = pnand %p1922_p10, %p2992_p1  ;;  %s2330_s24 = sshll.u32 %s2217_s23, 4  ;;  %s280_s24 = int_to_ptr.vmem [resolvable:$true] %s2330_s24 }
  0x17   : > { %p2340_p13 = pneg %p2324_p11 }
  0x1a   : > { %s1997_s27 = scalar_lea.hbm %s3003_s1, 256 }
  0x1b   : > { %p1998_p12 = scmp.ne.s32.totalorder %s3003_s1, %s1997_s27  ;;  %p2004_p5 = scmp.lt.u32.totalorder %s1997_s27, %s3003_s1 }
  0x1d   : > { %p2000_p0 = pnand %p2340_p13, %p1998_p12 }
  0x1f   : > { %p2001_p3 = pneg %p2000_p0 }
  0x21   : > { %p2006_p7 = pnand %p2004_p5, %p2001_p3 }
  0x23   : > { %2009 = shalt.err (!%p2006_p7)
}
  0x24   : > { %s2010_s23 = scalar_lea.vmem %s266_s19, 256  ;;  %p2018_p2 = scmp.lt.s32.totalorder %s266_s19, %s266_s19 }
  0x25   : > { %p2011_p10 = scmp.ne.s32.totalorder %s266_s19, %s2010_s23  ;;  %p2019_p6 = scmp.lt.s32.totalorder %s2010_s23, %s2010_s23 }
  0x27   : > { %p2013_p9 = pnand %p2011_p10, %p2340_p13  ;;  %p2020_p4 = por %p2019_p6, %p2018_p2 }
  0x29   : > { %p2014_p1 = pneg %p2013_p9 }
  0x2b   : > { %p2021_p8 = pnand %p2020_p4, %p2014_p1 }
  0x2d   : > { %2024 = shalt.err (!%p2021_p8)
}
  0x2e   : > { %1925 = dma.hbm_to_vmem [thread:$0]  (!%p2324_p11), %s3003_s1, 256, %s266_s19, [#allocation6]  }
  0x2f   : > { %s2025_s29 = scalar_lea.hbm %s2986_s4, 32768 }
  0x30   : > { %p2026_p9 = scmp.ne.s32.totalorder %s2986_s4, %s2025_s29  ;;  %p2032_p1 = scmp.lt.u32.totalorder %s2025_s29, %s2986_s4 }
  0x32   : > { %p2028_p12 = pnand %p2026_p9, %p2340_p13 }
  0x34   : > { %p2029_p2 = pneg %p2028_p12 }
  0x36   : > { %p2034_p4 = pnand %p2032_p1, %p2029_p2 }
  0x38   : > { %2037 = shalt.err (!%p2034_p4)
}
  0x39   : > { %s2038_s19 = scalar_lea.vmem %s2328_s21, 32768  ;;  %p2046_p3 = scmp.lt.s32.totalorder %s2328_s21, %s2328_s21 }
  0x3a   : > { %p2039_p6 = scmp.ne.s32.totalorder %s2328_s21, %s2038_s19  ;;  %p2047_p5 = scmp.lt.s32.totalorder %s2038_s19, %s2038_s19 }
  0x3c   : > { %p2041_p8 = pnand %p2039_p6, %p2340_p13  ;;  %p2048_p7 = por %p2047_p5, %p2046_p3 }
  0x3e   : > { %p2042_p0 = pneg %p2041_p8 }
  0x40   : > { %p2049_p10 = pnand %p2048_p7, %p2042_p0 }
  0x42   : > { %2052 = shalt.err (!%p2049_p10)
}
  0x43   : > { %s2996_s25 = smov 512   ;;  %s2219_s16 = smov 32  }
  0x44   : > { %1931 = dma.hbm_to_vmem [thread:$0]  (!%p2324_p11), %s2986_s4, 32768, %s2328_s21, [#allocation9], %s2996_s25, %s2996_s25, %s2219_s16  }
  0x45   : > { %s2053_s18 = scalar_lea.hbm %s2985_s3, 64 }
  0x46   : > { %p2054_p9 = scmp.ne.s32.totalorder %s2985_s3, %s2053_s18  ;;  %p2060_p1 = scmp.lt.u32.totalorder %s2053_s18, %s2985_s3 }
  0x48   : > { %p2056_p12 = pnand %p2054_p9, %p2340_p13 }
  0x4a   : > { %p2057_p2 = pneg %p2056_p12 }
  0x4c   : > { %p2062_p4 = pnand %p2060_p1, %p2057_p2 }
  0x4e   : > { %2065 = shalt.err (!%p2062_p4)
}
  0x4f   : > { %s2066_s26 = scalar_lea.vmem %s280_s24, 64  ;;  %p2074_p3 = scmp.lt.s32.totalorder %s280_s24, %s280_s24 }
  0x50   : > { %p2067_p6 = scmp.ne.s32.totalorder %s280_s24, %s2066_s26  ;;  %p2075_p5 = scmp.lt.s32.totalorder %s2066_s26, %s2066_s26 }
  0x52   : > { %p2069_p8 = pnand %p2067_p6, %p2340_p13  ;;  %p2076_p7 = por %p2075_p5, %p2074_p3 }
  0x54   : > { %p2070_p0 = pneg %p2069_p8 }
  0x56   : > { %p2077_p10 = pnand %p2076_p7, %p2070_p0 }
  0x58   : > { %2080 = shalt.err (!%p2077_p10)
}
  0x59   : > { %1928 = dma.hbm_to_vmem [thread:$0]  (!%p2324_p11), %s2985_s3, 64, %s280_s24, [#allocation6]  }
  0x5a   : > { %s2220_s1 = smov [#allocation10]   ;;  %s2081_s20 = scalar_lea.hbm %s2987_s5, 64 }
  0x5b   : > { %s303_s28 = sshll.u32 %s2220_s1, 4  ;;  %p2082_p9 = scmp.ne.s32.totalorder %s2987_s5, %s2081_s20  ;;  %s304_s28 = int_to_ptr.vmem [resolvable:$true] %s303_s28 }
  0x5c   : > { %p2088_p1 = scmp.lt.u32.totalorder %s2081_s20, %s2987_s5 }
  0x5d   : > { %p2084_p12 = pnand %p2082_p9, %p2340_p13 }
  0x5f   : > { %p2085_p2 = pneg %p2084_p12 }
  0x61   : > { %p2090_p4 = pnand %p2088_p1, %p2085_p2 }
  0x63   : > { %2093 = shalt.err (!%p2090_p4)
}
  0x64   : > { %s2094_s24 = scalar_lea.vmem %s304_s28, 64  ;;  %p2102_p3 = scmp.lt.s32.totalorder %s304_s28, %s304_s28 }
  0x65   : > { %p2095_p6 = scmp.ne.s32.totalorder %s304_s28, %s2094_s24  ;;  %p2103_p5 = scmp.lt.s32.totalorder %s2094_s24, %s2094_s24 }
  0x67   : > { %p2097_p8 = pnand %p2095_p6, %p2340_p13  ;;  %p2104_p7 = por %p2103_p5, %p2102_p3 }
  0x69   : > { %p2098_p0 = pneg %p2097_p8 }
  0x6b   : > { %p2105_p10 = pnand %p2104_p7, %p2098_p0 }
  0x6d   : > { %2108 = shalt.err (!%p2105_p10)
}
  0x6e   : > { %1934 = dma.hbm_to_vmem [thread:$0]  (!%p2324_p11), %s2987_s5, 64, %s304_s28, [#allocation9]  }
  0x6f   : > { %s2420_s14 = sadd.s32 1, %s2213_s12   ;;  %s34_s25 = sadd.s32 1, %s2209_s11 }
  0x70   : > { %s31_s22 = ssub.s32 %s2213_s12, %s2420_s14  ;;  %p41_p13 = scmp.ne.s32.totalorder %s2209_s11, %s2205_s10 }
  0x71   : > { %p32_p9 = scmp.eq.s32.totalorder %s31_s22, 0  ;;  %p42_p12 = scmp.eq.s32.totalorder %s2213_s12, 0 }
  0x72   : > { %p3005_p2 = scmp.eq.s32.totalorder %s2296_s13, 1  ;;  %p1947_p4 = scmp.lt.s32.totalorder %s2213_s12, 2 }
  0x73   : > { %s2436_s29 = scalar_select %p32_p9, %s2209_s11, %s34_s25  }
  0x74   : > { %p2430_p1 = por %p3005_p2, %p41_p13  ;;  %p43_p6 = por %p42_p12, %p41_p13 }
  0x75   : > { %s323_s18 = sand.u32 1, %s2209_s11   ;;  %s1628_s28 = sshll.u32 %s2213_s12, 10 }
  0x76   : > { %s1611_s20 = sshll.u32 %s323_s18, 6  ;;  %s2443_s26 = scalar_lea.hbm %s2982_s0, %s1628_s28 }
  0x77   : > { %s327_s24 = scalar_lea.vmem [#allocation2], %s1611_s20  ;;  %p2447_p11 = pnand %p1947_p4, %p43_p6 }
  0x78   : > { %s334_s21 = sshll.u32 %s327_s24, 4  ;;  %s2451_s25 = scalar_lea.sflag [#allocation3], %s323_s18  ;;  %s2445_s21 = int_to_ptr.vmem [resolvable:$true] %s334_s21 }
  0x79   : > { %s2109_s22 = scalar_lea.hbm %s2443_s26, 1024  ;;  %p2111_p0 = pneg %p2447_p11 }
  0x7a   : > { %p2110_p8 = scmp.ne.s32.totalorder %s2443_s26, %s2109_s22  ;;  %s2114_s23 = scalar_lea.hbm %s2982_s0, 2048 }
  0x7b   : > { %p2115_p7 = scmp.lt.u32.totalorder %s2443_s26, %s2982_s0  ;;  %p2116_p10 = scmp.lt.u32.totalorder %s2114_s23, %s2109_s22 }
  0x7c   : > { %p2112_p3 = pnand %p2111_p0, %p2110_p8  ;;  %p2118_p9 = scmp.lt.u32.totalorder %s2109_s22, %s2443_s26 }
  0x7d   : > { %p2117_p13 = por %p2116_p10, %p2115_p7 }
  0x7e   : > { %p2113_p5 = pneg %p2112_p3 }
  0x7f   : > { %p2119_p12 = por %p2118_p9, %p2117_p13 }
  0x81   : > { %p2120_p2 = pnand %p2119_p12, %p2113_p5 }
  0x83   : > { %2123 = shalt.err (!%p2120_p2)
}
  0x84   : > { %s2124_s18 = scalar_lea.vmem %s2445_s21, 1024  ;;  %s2221_s20 = smov [#allocation2]  }
  0x85   : > { %p2125_p4 = scmp.ne.s32.totalorder %s2445_s21, %s2124_s18  ;;  %s2129_s28 = sshll.u32 %s2221_s20, 4  ;;  %s2130_s28 = int_to_ptr.vmem [resolvable:$false] %s2129_s28 }
  0x86   : > { %s2131_s19 = scalar_lea.vmem %s2130_s28, 2048  ;;  %p2132_p3 = scmp.lt.s32.totalorder %s2445_s21, %s2130_s28 }
  0x87   : > { %p2127_p6 = pnand %p2125_p4, %p2111_p0  ;;  %p2133_p7 = scmp.lt.s32.totalorder %s2131_s19, %s2124_s18 }
  0x89   : > { %p2128_p8 = pneg %p2127_p6  ;;  %p2134_p10 = por %p2133_p7, %p2132_p3 }
  0x8b   : > { %p2135_p13 = pnand %p2134_p10, %p2128_p8 }
  0x8d   : > { %2138 = shalt.err (!%p2135_p13)
}
  0x8e   : > { %s3008_s22 = smov 512   ;;  %p3009_p0 = scmp.ne.s32.totalorder %s3001_s17, 0 }
  0x8f   : > { %1938 = dma.hbm_to_vmem [thread:$0]  (!%p2447_p11), %s2443_s26, 1024, %s2445_s21, %s2451_s25, %s3008_s22, %s3008_s22, %s2219_s16  }
  0x90   : > { %346 = sbr.rel (%p3009_p0) target bundleno = 555 (0x22b), region = 56  ;;  %s2485_s23 = sand.u32 (!%p3009_p0), 1, %s2205_s10  }
  0x91   : > { %s1615_s24 = sshll.u32 (!%p3009_p0), %s2485_s23, 6  ;;  %s349_s18 = scalar_lea.sflag (!%p3009_p0), [#allocation3], %s2485_s23 }
  0x92   : > { %s2491_s27 = scalar_lea.vmem (!%p3009_p0), [#allocation2], %s1615_s24  ;;  %p3010_p5 = scmp.ne.s32.totalorder (!%p3009_p0), %s2998_s15, 0 }
  0x97   : > { %2184 = dma.done.wait (%p3010_p5), %s349_s18, 1024  }
  0x98   : > { %2186 = vsyncadd (%p3010_p5), %s349_s18, 4294966272  ;;  %p3011_p11 = scmp.eq.s32.totalorder %s2296_s13, 0 }
  0x9a   : > { %2188 = dma.done.wait (%p3011_p11), [#allocation6], 320   ;;  %p3012_p9 = pmov %p3011_p11 }
  0x9c   : > { %2190 = vsyncadd (%p3012_p9), [#allocation6], 4294966976  ;;  %p3013_p12 = pmov %p3012_p9 }
  0x9d   : > { %p3014_p2 = pmov %p3012_p9 }
  0x9e   : > { %2192 = dma.done.wait (%p3013_p12), [#allocation9], 32832  }
  0x9f   : > { %2194 = vsyncadd (%p3014_p2), [#allocation9], 4294934464  ;;  %v646_v0 = vld [vmem:[#allocation8 + $0x8] sm:$0xff]  ;;  %v648_v2 = vld [vmem:[#allocation8 + $0x18] sm:$0xff]  ;;  %vm450_vm0 = vcmask 1040384   ;;  %vm513_vm1 = vcmask 1046528  }
  0xa0   : > { %v650_v1 = vld [vmem:[#allocation8 + $0x28] sm:$0xff]  ;;  %v652_v4 = vld [vmem:[#allocation8 + $0x38] sm:$0xff]  ;;  %v645_v5 = vld [vmem:[#allocation8] sm:$0xff]  ;;  %s2900_s17 = scalar_lea.vmem [#allocation11], %s1615_s24  ;;  %s1629_s24 = sshll.u32 %s2296_s13, 10 }
  0xa1   : > { %v1630_v3 = vpack.c.bf16 %v650_v1, %v646_v0  ;;  %v649_v6 = vld [vmem:[#allocation8 + $0x20] sm:$0xff]  ;;  %v1758_v7 = vpack.c.bf16 %v652_v4, %v648_v2  ;;  %v647_v9 = vld [vmem:[#allocation8 + $0x10] sm:$0xff]  ;;  %v654_v11 = vld [vmem:[#allocation8 + $0x48] sm:$0xff]  ;;  %s1493_s16 = sshll.u32 %s2900_s17, 4  ;;  %s2932_s25 = scalar_lea.hbm %s2991_s9, %s1629_s24  ;;  %s2934_s16 = int_to_ptr.vmem [resolvable:$true] %s1493_s16 }
  0xa2   : > { %v1632_v8 = vpack.c.bf16 %v649_v6, %v645_v5  ;;  %v651_v10 = vld [vmem:[#allocation8 + $0x30] sm:$0xff]  ;;  %v658_v13 = vld [vmem:[#allocation8 + $0x68] sm:$0xff]  ;;  %v656_v14 = vld [vmem:[#allocation8 + $0x58] sm:$0xff]  ;;  %s1480_s13 = scalar_lea.sflag [#allocation4], %s2485_s23  ;;  %s2222_s20 = smov [#allocation11]  }
  0xa3   : > { %1631 = vmatprep.subr.bf16.mxu0 %v1630_v3  ;;  %v1760_v12 = vpack.c.bf16 %v651_v10, %v647_v9  ;;  %v660_v15 = vld [vmem:[#allocation8 + $0x78] sm:$0xff]  ;;  %1759 = vmatprep.subr.bf16.mxu1 %v1758_v7  ;;  %v1634_v16 = vpack.c.bf16 %v658_v13, %v654_v11  ;;  %v653_v18 = vld [vmem:[#allocation8 + $0x40] sm:$0xff]  ;;  %v655_v20 = vld [vmem:[#allocation8 + $0x50] sm:$0xff]  ;;  %s2143_s28 = sshll.u32 %s2222_s20, 4  ;;  %s2144_s28 = int_to_ptr.vmem [resolvable:$false] %s2143_s28 }
  0xa4   : > { %1633 = vmatpush1.bf16.msra.mxu0 %v1632_v8  ;;  %v1762_v17 = vpack.c.bf16 %v660_v15, %v656_v14  ;;  %v657_v19 = vld [vmem:[#allocation8 + $0x60] sm:$0xff]  ;;  %v659_v22 = vld [vmem:[#allocation8 + $0x70] sm:$0xff]  ;;  %v662_v23 = vld [vmem:[#allocation8 + $0x88] sm:$0xff]  ;;  %s2145_s19 = scalar_lea.vmem %s2144_s28, 2048  ;;  %p2146_p3 = scmp.lt.s32.totalorder %s2934_s16, %s2144_s28 }
  0xa5   : > { %1761 = vmatpush1.bf16.msra.mxu1 %v1760_v12  ;;  %v1636_v21 = vpack.c.bf16 %v657_v19, %v653_v18  ;;  %v666_v24 = vld [vmem:[#allocation8 + $0xa8] sm:$0xff]  ;;  %1635 = vmatprep.subr.bf16.mxu0 %v1634_v16  ;;  %v1764_v25 = vpack.c.bf16 %v659_v22, %v655_v20  ;;  %v664_v27 = vld [vmem:[#allocation8 + $0x98] sm:$0xff]  ;;  %v661_v29 = vld [vmem:[#allocation8 + $0x80] sm:$0xff] }
  0xa6   : > { %1763 = vmatprep.subr.bf16.mxu1 %v1762_v17  ;;  %v1638_v26 = vpack.c.bf16 %v666_v24, %v662_v23  ;;  %v668_v28 = vld [vmem:[#allocation8 + $0xb8] sm:$0xff]  ;;  %v665_v31 = vld [vmem:[#allocation8 + $0xa0] sm:$0xff]  ;;  %v663_v32 = vld [vmem:[#allocation8 + $0x90] sm:$0xff] }
  0xa7   : > { %v1766_v30 = vpack.c.bf16 %v668_v28, %v664_v27  ;;  %v667_v33 = vld [vmem:[#allocation8 + $0xb0] sm:$0xff]  ;;  %v1640_v34 = vpack.c.bf16 %v665_v31, %v661_v29  ;;  %v670_v35 = vld [vmem:[#allocation8 + $0xc8] sm:$0xff]  ;;  %v672_v37 = vld [vmem:[#allocation8 + $0xd8] sm:$0xff] }
  0xa8   : > { %1637 = vmatpush1.bf16.msra.mxu0 %v1636_v21  ;;  %v674_v36 = vld [vmem:[#allocation8 + $0xe8] sm:$0xff]  ;;  %v1768_v38 = vpack.c.bf16 %v667_v33, %v663_v32  ;;  %v676_v40 = vld [vmem:[#allocation8 + $0xf8] sm:$0xff]  ;;  %v669_v41 = vld [vmem:[#allocation8 + $0xc0] sm:$0xff] }
  0xa9   : > { %1765 = vmatpush1.bf16.msra.mxu1 %v1764_v25  ;;  %1639 = vmatprep.subr.bf16.mxu0 %v1638_v26  ;;  %v1642_v39 = vpack.c.bf16 %v674_v36, %v670_v35  ;;  %v673_v42 = vld [vmem:[#allocation8 + $0xe0] sm:$0xff]  ;;  %v1770_v43 = vpack.c.bf16 %v676_v40, %v672_v37  ;;  %v671_v44 = vld [vmem:[#allocation8 + $0xd0] sm:$0xff]  ;;  %v678_v46 = vld [vmem:[#allocation8 + $0x108] sm:$0xff] }
  0xaa   : > { %1767 = vmatprep.subr.bf16.mxu1 %v1766_v30  ;;  %v675_v45 = vld [vmem:[#allocation8 + $0xf0] sm:$0xff]  ;;  %v682_v47 = vld [vmem:[#allocation8 + $0x128] sm:$0xff]  ;;  %v680_v48 = vld [vmem:[#allocation8 + $0x118] sm:$0xff]  ;;  %v1644_v50 = vpack.c.bf16 %v673_v42, %v669_v41 }
  0xab   : > { %v684_v49 = vld [vmem:[#allocation8 + $0x138] sm:$0xff]  ;;  %v1772_v51 = vpack.c.bf16 %v675_v45, %v671_v44  ;;  %v1646_v52 = vpack.c.bf16 %v682_v47, %v678_v46  ;;  %v677_v53 = vld [vmem:[#allocation8 + $0x100] sm:$0xff]  ;;  %v679_v55 = vld [vmem:[#allocation8 + $0x110] sm:$0xff]  ;;  %v414_v47 = vlaneseq }
  0xac   : > { %1641 = vmatpush1.bf16.msra.mxu0 %v1640_v34  ;;  %v681_v54 = vld [vmem:[#allocation8 + $0x120] sm:$0xff]  ;;  %v1774_v56 = vpack.c.bf16 %v684_v49, %v680_v48  ;;  %v683_v57 = vld [vmem:[#allocation8 + $0x130] sm:$0xff]  ;;  %v686_v58 = vld [vmem:[#allocation8 + $0x148] sm:$0xff] }
  0xad   : > { %1769 = vmatpush1.bf16.msra.mxu1 %v1768_v38  ;;  %1643 = vmatprep.subr.bf16.mxu0 %v1642_v39  ;;  %v690_v59 = vld [vmem:[#allocation8 + $0x168] sm:$0xff]  ;;  %v688_v60 = vld [vmem:[#allocation8 + $0x158] sm:$0xff]  ;;  %v1648_v62 = vpack.c.bf16 %v681_v54, %v677_v53  ;;  %v1776_v63 = vpack.c.bf16 %v683_v57, %v679_v55  ;;  %v685_v1 = vld [vmem:[#allocation8 + $0x140] sm:$0xff] }
  0xae   : > { %1771 = vmatprep.subr.bf16.mxu1 %v1770_v43  ;;  %v692_v61 = vld [vmem:[#allocation8 + $0x178] sm:$0xff]  ;;  %v1650_v0 = vpack.c.bf16 %v690_v59, %v686_v58  ;;  %v689_v2 = vld [vmem:[#allocation8 + $0x160] sm:$0xff]  ;;  %v687_v3 = vld [vmem:[#allocation8 + $0x150] sm:$0xff] }
  0xaf   : > { %v1778_v4 = vpack.c.bf16 %v692_v61, %v688_v60  ;;  %v691_v5 = vld [vmem:[#allocation8 + $0x170] sm:$0xff]  ;;  %v694_v6 = vld [vmem:[#allocation8 + $0x188] sm:$0xff]  ;;  %v696_v8 = vld [vmem:[#allocation8 + $0x198] sm:$0xff]  ;;  %v1652_v10 = vpack.c.bf16 %v689_v2, %v685_v1  ;;  %v2505_v61 = vshrl.u32 %v414_v47, 7 }
  0xb0   : > { %1645 = vmatpush1.bf16.msra.mxu0 %v1644_v50  ;;  %v698_v7 = vld [vmem:[#allocation8 + $0x1a8] sm:$0xff]  ;;  %v700_v9 = vld [vmem:[#allocation8 + $0x1b8] sm:$0xff]  ;;  %v1780_v11 = vpack.c.bf16 %v691_v5, %v687_v3  ;;  %v693_v13 = vld [vmem:[#allocation8 + $0x180] sm:$0xff] }
  0xb1   : > { %1773 = vmatpush1.bf16.msra.mxu1 %v1772_v51  ;;  %1647 = vmatprep.subr.bf16.mxu0 %v1646_v52  ;;  %v1654_v12 = vpack.c.bf16 %v698_v7, %v694_v6  ;;  %v697_v14 = vld [vmem:[#allocation8 + $0x1a0] sm:$0xff]  ;;  %v695_v15 = vld [vmem:[#allocation8 + $0x190] sm:$0xff]  ;;  %v1782_v16 = vpack.c.bf16 %v700_v9, %v696_v8  ;;  %v702_v18 = vld [vmem:[#allocation8 + $0x1c8] sm:$0xff] }
  0xb2   : > { %1775 = vmatprep.subr.bf16.mxu1 %v1774_v56  ;;  %v699_v17 = vld [vmem:[#allocation8 + $0x1b0] sm:$0xff]  ;;  %v706_v19 = vld [vmem:[#allocation8 + $0x1e8] sm:$0xff]  ;;  %v704_v20 = vld [vmem:[#allocation8 + $0x1d8] sm:$0xff]  ;;  %v1656_v22 = vpack.c.bf16 %v697_v14, %v693_v13  ;;  %v2508_v14 = vsub.s32 1, %v2505_v61 }
  0xb3   : > { %v708_v21 = vld [vmem:[#allocation8 + $0x1f8] sm:$0xff]  ;;  %v1784_v23 = vpack.c.bf16 %v699_v17, %v695_v15  ;;  %v1658_v24 = vpack.c.bf16 %v706_v19, %v702_v18  ;;  %v701_v25 = vld [vmem:[#allocation8 + $0x1c0] sm:$0xff]  ;;  %v703_v27 = vld [vmem:[#allocation8 + $0x1d0] sm:$0xff] }
  0xb4   : > { %1649 = vmatpush1.bf16.msra.mxu0 %v1648_v62  ;;  %v705_v26 = vld [vmem:[#allocation8 + $0x1e0] sm:$0xff]  ;;  %v1786_v28 = vpack.c.bf16 %v708_v21, %v704_v20  ;;  %v707_v29 = vld [vmem:[#allocation8 + $0x1f0] sm:$0xff]  ;;  %v710_v30 = vld [vmem:[#allocation8 + $0x208] sm:$0xff] }
  0xb5   : > { %1777 = vmatpush1.bf16.msra.mxu1 %v1776_v63  ;;  %1651 = vmatprep.subr.bf16.mxu0 %v1650_v0  ;;  %v714_v31 = vld [vmem:[#allocation8 + $0x228] sm:$0xff]  ;;  %v712_v32 = vld [vmem:[#allocation8 + $0x218] sm:$0xff]  ;;  %v1660_v34 = vpack.c.bf16 %v705_v26, %v701_v25  ;;  %v1788_v35 = vpack.c.bf16 %v707_v29, %v703_v27  ;;  %v709_v37 = vld [vmem:[#allocation8 + $0x200] sm:$0xff] }
  0xb6   : > { %1779 = vmatprep.subr.bf16.mxu1 %v1778_v4  ;;  %v716_v33 = vld [vmem:[#allocation8 + $0x238] sm:$0xff]  ;;  %v1662_v36 = vpack.c.bf16 %v714_v31, %v710_v30  ;;  %v713_v38 = vld [vmem:[#allocation8 + $0x220] sm:$0xff]  ;;  %v711_v39 = vld [vmem:[#allocation8 + $0x210] sm:$0xff] }
  0xb7   : > { %v1790_v40 = vpack.c.bf16 %v716_v33, %v712_v32  ;;  %v715_v41 = vld [vmem:[#allocation8 + $0x230] sm:$0xff]  ;;  %v718_v42 = vld [vmem:[#allocation8 + $0x248] sm:$0xff]  ;;  %v720_v44 = vld [vmem:[#allocation8 + $0x258] sm:$0xff]  ;;  %v1664_v46 = vpack.c.bf16 %v713_v38, %v709_v37 }
  0xb8   : > { %1653 = vmatpush1.bf16.msra.mxu0 %v1652_v10  ;;  %v722_v43 = vld [vmem:[#allocation8 + $0x268] sm:$0xff]  ;;  %v724_v45 = vld [vmem:[#allocation8 + $0x278] sm:$0xff]  ;;  %v1792_v48 = vpack.c.bf16 %v715_v41, %v711_v39  ;;  %v717_v50 = vld [vmem:[#allocation8 + $0x240] sm:$0xff] }
  0xb9   : > { %1781 = vmatpush1.bf16.msra.mxu1 %v1780_v11  ;;  %1655 = vmatprep.subr.bf16.mxu0 %v1654_v12  ;;  %v1666_v49 = vpack.c.bf16 %v722_v43, %v718_v42  ;;  %v721_v51 = vld [vmem:[#allocation8 + $0x260] sm:$0xff]  ;;  %v719_v52 = vld [vmem:[#allocation8 + $0x250] sm:$0xff]  ;;  %v1794_v53 = vpack.c.bf16 %v724_v45, %v720_v44  ;;  %v726_v55 = vld [vmem:[#allocation8 + $0x288] sm:$0xff] }
  0xba   : > { %1783 = vmatprep.subr.bf16.mxu1 %v1782_v16  ;;  %v723_v54 = vld [vmem:[#allocation8 + $0x270] sm:$0xff]  ;;  %v730_v56 = vld [vmem:[#allocation8 + $0x2a8] sm:$0xff]  ;;  %v728_v57 = vld [vmem:[#allocation8 + $0x298] sm:$0xff]  ;;  %v1668_v59 = vpack.c.bf16 %v721_v51, %v717_v50 }
  0xbb   : > { %v732_v58 = vld [vmem:[#allocation8 + $0x2b8] sm:$0xff]  ;;  %v725_v60 = vld [vmem:[#allocation8 + $0x280] sm:$0xff]  ;;  %v1796_v62 = vpack.c.bf16 %v723_v54, %v719_v52  ;;  %v1670_v63 = vpack.c.bf16 %v730_v56, %v726_v55  ;;  %v727_v1 = vld [vmem:[#allocation8 + $0x290] sm:$0xff] }
  0xbc   : > { %1657 = vmatpush1.bf16.msra.mxu0 %v1656_v22  ;;  %v729_v0 = vld [vmem:[#allocation8 + $0x2a0] sm:$0xff]  ;;  %v731_v2 = vld [vmem:[#allocation8 + $0x2b0] sm:$0xff]  ;;  %v1798_v3 = vpack.c.bf16 %v732_v58, %v728_v57  ;;  %v734_v4 = vld [vmem:[#allocation8 + $0x2c8] sm:$0xff] }
  0xbd   : > { %1785 = vmatpush1.bf16.msra.mxu1 %v1784_v23  ;;  %1659 = vmatprep.subr.bf16.mxu0 %v1658_v24  ;;  %v738_v5 = vld [vmem:[#allocation8 + $0x2e8] sm:$0xff]  ;;  %v736_v6 = vld [vmem:[#allocation8 + $0x2d8] sm:$0xff]  ;;  %v733_v8 = vld [vmem:[#allocation8 + $0x2c0] sm:$0xff]  ;;  %v1672_v10 = vpack.c.bf16 %v729_v0, %v725_v60  ;;  %v1800_v15 = vpack.c.bf16 %v731_v2, %v727_v1  ;;  %v2518_v24 = vsub.s32 0, %v2505_v61 }
  0xbe   : > { %1787 = vmatprep.subr.bf16.mxu1 %v1786_v28  ;;  %v740_v7 = vld [vmem:[#allocation8 + $0x2f8] sm:$0xff]  ;;  %v737_v9 = vld [vmem:[#allocation8 + $0x2e0] sm:$0xff]  ;;  %v735_v11 = vld [vmem:[#allocation8 + $0x2d0] sm:$0xff]  ;;  %v1674_v16 = vpack.c.bf16 %v738_v5, %v734_v4 }
  0xbf   : > { %v739_v12 = vld [vmem:[#allocation8 + $0x2f0] sm:$0xff]  ;;  %v742_v13 = vld [vmem:[#allocation8 + $0x308] sm:$0xff]  ;;  %v744_v18 = vld [vmem:[#allocation8 + $0x318] sm:$0xff]  ;;  %v1802_v20 = vpack.c.bf16 %v740_v7, %v736_v6  ;;  %v1676_v31 = vpack.c.bf16 %v737_v9, %v733_v8 }
  0xc0   : > { %1661 = vmatpush1.bf16.msra.mxu0 %v1660_v34  ;;  %v746_v17 = vld [vmem:[#allocation8 + $0x328] sm:$0xff]  ;;  %v748_v19 = vld [vmem:[#allocation8 + $0x338] sm:$0xff]  ;;  %v2510_v21 = vld [vmem:[#allocation8 + $0x300] sm:$0xff]  ;;  %v1804_v32 = vpack.c.bf16 %v739_v12, %v735_v11 }
  0xc1   : > { %1789 = vmatpush1.bf16.msra.mxu1 %v1788_v35  ;;  %1663 = vmatprep.subr.bf16.mxu0 %v1662_v36  ;;  %v2512_v22 = vld [vmem:[#allocation8 + $0x320] sm:$0xff]  ;;  %v2515_v23 = vld [vmem:[%s2491_s27 + $0x8] sm:$0xff]  ;;  %v750_v33 = vld [vmem:[#allocation8 + $0x348] sm:$0xff]  ;;  %v1678_v38 = vpack.c.bf16 %v746_v17, %v742_v13  ;;  %v1806_v39 = vpack.c.bf16 %v748_v19, %v744_v18 }
  0xc2   : > { %1791 = vmatprep.subr.bf16.mxu1 %v1790_v40  ;;  %v2520_v25 = vld [vmem:[#allocation8 + $0x310] sm:$0xff]  ;;  %v452_v29 = vrot.slane %v2515_v23, 7  ;;  %v517_v30 = vrot.slane %v2515_v23, 1  ;;  %v754_v34 = vld [vmem:[#allocation8 + $0x368] sm:$0xff]  ;;  %v752_v44 = vld [vmem:[#allocation8 + $0x358] sm:$0xff] }
  0xc3   : > { %v2522_v26 = vld [vmem:[#allocation8 + $0x330] sm:$0xff]  ;;  %v2550_v43 = vld [vmem:[%s2984_s2] sm:$0xf]  ;;  %v756_v50 = vld [vmem:[#allocation8 + $0x378] sm:$0xff]  ;;  %v1682_v55 = vpack.c.bf16 %v754_v34, %v750_v33 }
  0xc4   : > { %1665 = vmatpush1.bf16.msra.mxu0 %v1664_v46  ;;  %v2525_v27 = vld [vmem:[%s2491_s27 + $0x28] sm:$0xff]  ;;  %v472_v40 = vsel %vm450_vm0, 0.0, %v452_v29  ;;  %v2569_v52 = vld [vmem:[%s2491_s27] sm:$0xff]  ;;  %v1808_v54 = vpack.c.bf16 %v2522_v26, %v2520_v25  ;;  %v749_v56 = vld [vmem:[#allocation8 + $0x340] sm:$0xff]  ;;  %v1810_v4 = vpack.c.bf16 %v756_v50, %v752_v44 }
  0xc5   : > { %1793 = vmatpush1.bf16.msra.mxu1 %v1792_v48  ;;  %1667 = vmatprep.subr.bf16.mxu0 %v1666_v49  ;;  %v2527_v28 = vld [vmem:[#allocation5 + $0x1] ss:$4 sm:$0xf]  ;;  %v2535_v36 = vld [vmem:[#allocation5] ss:$4 sm:$0xf]  ;;  %v1680_v49 = vpack.c.bf16 %v2512_v22, %v2510_v21 }
  0xc6   : > { %1795 = vmatprep.subr.bf16.mxu1 %v1794_v53  ;;  %v2533_v35 = vrot.slane %v2527_v28, %v2508_v14  ;;  %v518_v37 = vrot.slane %v2525_v27, 1  ;;  %v2543_v41 = vrot.slane %v2535_v36, %v2508_v14  ;;  %v2545_v42 = vld [vmem:[#allocation5 + $0x2] ss:$4 sm:$0xf]  ;;  %v2563_v48 = vrot.slane %v2527_v28, %v2518_v24  ;;  %v2577_v58 = vld [vmem:[#allocation7] sm:$0xf] }
  0xc7   : > { %v2559_v47 = vrot.slane %v2545_v42, %v2508_v14  ;;  %v2572_v53 = vld [vmem:[%s2491_s27 + $0x20] sm:$0xff]  ;;  %v753_v60 = vld [vmem:[#allocation8 + $0x360] sm:$0xff]  ;;  %v451_v1 = vrot.slane %v2569_v52, 7  ;;  %v2586_v2 = vrot.slane %v2535_v36, %v2518_v24  ;;  %v2594_v9 = vrot.slane %v2545_v42, %v2518_v24  ;;  %v764_v11 = vld [vmem:[#allocation8 + $0x3b8] sm:$0xff] }
  0xc8   : > { %1669 = vmatpush1.bf16.msra.mxu0 %v1668_v59  ;;  %v435_v45 = vmul.f32 %v2533_v35, %v2515_v23  ;;  %v519_v46 = vsel %vm513_vm1, %v517_v30, %v518_v37  ;;  %v498_v51 = vmul.f32 %v2543_v41, %v472_v40  ;;  %v2581_v59 = vrot.slane %v2550_v43, %v2508_v14  ;;  %v758_v5 = vld [vmem:[#allocation8 + $0x388] sm:$0xff]  ;;  %v757_v18 = vld [vmem:[#allocation8 + $0x380] sm:$0xff]  ;;  %v759_v25 = vld [vmem:[#allocation8 + $0x390] sm:$0xff] }
  0xc9   : > { %1797 = vmatpush1.bf16.msra.mxu1 %v1796_v62  ;;  %1671 = vmatprep.subr.bf16.mxu0 %v1670_v63  ;;  %v562_v57 = vmul.f32 %v2559_v47, %v519_v46  ;;  %v751_v62 = vld [vmem:[#allocation8 + $0x350] sm:$0xff]  ;;  %v762_v6 = vld [vmem:[#allocation8 + $0x3a8] sm:$0xff]  ;;  %v434_v7 = vmul.f32 %v2563_v48, %v2569_v52  ;;  %v515_v8 = vrot.slane %v2572_v53, 1  ;;  %v2598_v13 = vrot.slane %v2577_v58, %v2508_v14  ;;  %v761_v19 = vld [vmem:[#allocation8 + $0x3a0] sm:$0xff] }
  0xca   : > { %1799 = vmatprep.subr.bf16.mxu1 %v1798_v3  ;;  %v755_v63 = vld [vmem:[#allocation8 + $0x370] sm:$0xff]  ;;  %v506_v0 = vadd.f32 %v498_v51, %v435_v45  ;;  %v514_v3 = vrot.slane %v2569_v52, 1  ;;  %v1686_v22 = vpack.c.bf16 %v762_v6, %v758_v5  ;;  %v766_v34 = vld [vmem:[#allocation8 + $0x3c8] sm:$0xff]  ;;  %v2612_v40 = vrot.slane %v2550_v43, %v2518_v24  ;;  %v768_v45 = vld [vmem:[#allocation8 + $0x3d8] sm:$0xff] }
  0xcb   : > { %v1812_v17 = vpack.c.bf16 %v755_v63, %v751_v62  ;;  %v763_v26 = vld [vmem:[#allocation8 + $0x3b0] sm:$0xff]  ;;  %v1688_v44 = vpack.c.bf16 %v761_v19, %v757_v18  ;;  %v772_v46 = vld [vmem:[#allocation8 + $0x3f8] sm:$0xff]  ;;  %v439_v50 = vmul.f32 %v2533_v35, %v2525_v27  ;;  %v774_v6 = vld [vmem:[#allocation8 + $0x408] sm:$0xff] }
  0xcc   : > { %1673 = vmatpush1.bf16.msra.mxu0 %v1672_v10  ;;  %v760_v10 = vld [vmem:[#allocation8 + $0x398] sm:$0xff]  ;;  %v570_v12 = vadd.f32 %v562_v57, %v506_v0  ;;  %v516_v21 = vsel %vm513_vm1, %v514_v3, %v515_v8  ;;  %v1816_v51 = vpack.c.bf16 %v763_v26, %v759_v25  ;;  %v2619_v57 = vrot.slane %v2577_v58, %v2518_v24  ;;  %v767_v63 = vld [vmem:[#allocation8 + $0x3d0] sm:$0xff]  ;;  %v773_v18 = vld [vmem:[#allocation8 + $0x400] sm:$0xff] }
  0xcd   : > { %1801 = vmatpush1.bf16.msra.mxu1 %v1800_v15  ;;  %1675 = vmatprep.subr.bf16.mxu0 %v1674_v16  ;;  %v471_v15 = vsel %vm450_vm0, 0.0, %v451_v1  ;;  %v1684_v16 = vpack.c.bf16 %v753_v60, %v749_v56  ;;  %v1814_v33 = vpack.c.bf16 %v764_v11, %v760_v10  ;;  %v771_v0 = vld [vmem:[#allocation8 + $0x3f0] sm:$0xff]  ;;  %v1818_v5 = vpack.c.bf16 %v772_v46, %v768_v45  ;;  %v776_v11 = vld [vmem:[#allocation8 + $0x418] sm:$0xff]  ;;  %v777_v19 = vld [vmem:[#allocation8 + $0x420] sm:$0xff] }
  0xce   : > { %1803 = vmatprep.subr.bf16.mxu1 %v1802_v20  ;;  %v497_v20 = vmul.f32 %v2586_v2, %v471_v15  ;;  %v601_v30 = vmul.f32 %v2581_v59, %v570_v12  ;;  %v780_v12 = vld [vmem:[#allocation8 + $0x438] sm:$0xff]  ;;  %v779_v26 = vld [vmem:[#allocation8 + $0x430] sm:$0xff]  ;;  %v785_v45 = vld [vmem:[#allocation8 + $0x460] sm:$0xff] }
  0xcf   : > { %v1822_v25 = vpack.c.bf16 %v780_v12, %v776_v11  ;;  %v783_v46 = vld [vmem:[#allocation8 + $0x450] sm:$0xff] }
  0xd0   : > { %1677 = vmatpush1.bf16.msra.mxu0 %v1676_v31  ;;  %v561_v31 = vmul.f32 %v2594_v9, %v516_v21 }
  0xd1   : > { %1805 = vmatpush1.bf16.msra.mxu1 %v1804_v32  ;;  %1679 = vmatprep.subr.bf16.mxu0 %v1678_v38  ;;  %v457_v32 = vrot.slane %v2525_v27, 7  ;;  %v770_v38 = vld [vmem:[#allocation8 + $0x3e8] sm:$0xff]  ;;  %v1820_v27 = vpack.c.bf16 %v771_v0, %v767_v63 }
  0xd2   : > { %1807 = vmatprep.subr.bf16.mxu1 %v1806_v39  ;;  %v505_v39 = vadd.f32 %v497_v20, %v434_v7  ;;  %v1690_v62 = vpack.c.bf16 %v770_v38, %v766_v34  ;;  %v778_v7 = vld [vmem:[#allocation8 + $0x428] sm:$0xff]  ;;  %v775_v20 = vld [vmem:[#allocation8 + $0x410] sm:$0xff]  ;;  %v1696_v38 = vpack.c.bf16 %v777_v19, %v773_v18  ;;  %v812_v19 = vld [vmem:[#allocation8 + $0x538] sm:$0xff] }
  0xd3   : > { %v458_v60 = vsel %vm450_vm0, %v452_v29, %v457_v32  ;;  %v788_v32 = vld [vmem:[#allocation8 + $0x478] sm:$0xff]  ;;  %v1824_v52 = vpack.c.bf16 %v779_v26, %v775_v20  ;;  %v810_v18 = vld [vmem:[#allocation8 + $0x528] sm:$0xff]  ;;  %v809_v26 = vld [vmem:[#allocation8 + $0x520] sm:$0xff] }
  0xd4   : > { %1681 = vmatpush1.bf16.msra.mxu0 %v1680_v49  ;;  %v630_v49 = vadd.f32 %v2598_v13, %v601_v30  ;;  %v569_v56 = vadd.f32 %v561_v31, %v505_v39  ;;  %v502_v35 = vmul.f32 %v2543_v41, %v458_v60  ;;  %v455_v41 = vrot.slane %v2572_v53, 7  ;;  %v782_v30 = vld [vmem:[#allocation8 + $0x448] sm:$0xff] }
  0xd5   : > { %1809 = vmatpush1.bf16.msra.mxu1 %v1808_v54  ;;  %1683 = vmatprep.subr.bf16.mxu0 %v1682_v55  ;;  %v765_v54 = vld [vmem:[#allocation8 + $0x3c0] sm:$0xff] }
  0xd6   : > { %1811 = vmatprep.subr.bf16.mxu1 %v1810_v4  ;;  %v769_v55 = vld [vmem:[#allocation8 + $0x3e0] sm:$0xff]  ;;  %v638_v3 = vmax.f32 %v630_v49, 0.0  ;;  %v535_v4 = vsel %vm513_vm1, %v518_v37, 0.0  ;;  %v600_v23 = vmul.f32 %v2612_v40, %v569_v56  ;;  %v510_v15 = vadd.f32 %v502_v35, %v439_v50  ;;  %v787_v50 = vld [vmem:[#allocation8 + $0x470] sm:$0xff] }
  0xd7   : > { %v566_v29 = vmul.f32 %v2559_v47, %v535_v4  ;;  %v1692_v10 = vpack.c.bf16 %v769_v55, %v765_v54  ;;  %v1694_v47 = vpack.c.bf16 %v778_v7, %v774_v6  ;;  %v794_v54 = vld [vmem:[#allocation8 + $0x4a8] sm:$0xff]  ;;  %v796_v55 = vld [vmem:[#allocation8 + $0x4b8] sm:$0xff]  ;;  %v1828_v63 = vpack.c.bf16 %v787_v50, %v783_v46  ;;  %v791_v35 = vld [vmem:[#allocation8 + $0x490] sm:$0xff] }
  0xd8   : > { %1685 = vmatpush1.bf16.msra.mxu0 %v1684_v16  ;;  %987 = vmatprep.mubr.f32.mxu0 %v638_v3  ;;  %v629_v37 = vadd.f32 %v2619_v57, %v600_v23  ;;  %v438_v16 = vmul.f32 %v2563_v48, %v2572_v53  ;;  %v786_v48 = vld [vmem:[#allocation8 + $0x468] sm:$0xff]  ;;  %v819_v46 = vld [vmem:[#allocation8 + $0x570] sm:$0xff]  ;;  %v2647_v50 = vsub.s32 2, %v2505_v61 }
  0xd9   : > { %1813 = vmatpush1.bf16.msra.mxu1 %v1812_v17  ;;  %1687 = vmatprep.subr.bf16.mxu0 %v1686_v22  ;;  %v534_v17 = vsel %vm513_vm1, %v515_v8, 0.0  ;;  %v574_v21 = vadd.f32 %v566_v29, %v510_v15  ;;  %v456_v22 = vsel %vm450_vm0, %v451_v1, %v455_v41  ;;  %v784_v8 = vld [vmem:[#allocation8 + $0x458] sm:$0xff]  ;;  %v1698_v1 = vpack.c.bf16 %v786_v48, %v782_v30  ;;  %v798_v6 = vld [vmem:[#allocation8 + $0x4c8] sm:$0xff]  ;;  %v797_v41 = vld [vmem:[#allocation8 + $0x4c0] sm:$0xff] }
  0xda   : > { %1815 = vmatprep.subr.bf16.mxu1 %v1814_v33  ;;  %1141 = vmatprep.mubr.f32.mxu1 %v638_v3  ;;  %v501_v53 = vmul.f32 %v2586_v2, %v456_v22  ;;  %v637_v31 = vmax.f32 %v629_v37, 0.0  ;;  %v565_v34 = vmul.f32 %v2594_v9, %v534_v17  ;;  %v1826_v2 = vpack.c.bf16 %v788_v32, %v784_v8  ;;  %v792_v9 = vld [vmem:[#allocation8 + $0x498] sm:$0xff]  ;;  %v793_v3 = vld [vmem:[#allocation8 + $0x4a0] sm:$0xff]  ;;  %v802_v7 = vld [vmem:[#allocation8 + $0x4e8] sm:$0xff] }
  0xdb   : > { %v605_v33 = vmul.f32 %v2581_v59, %v574_v21  ;;  %v1830_v4 = vpack.c.bf16 %v796_v55, %v792_v9  ;;  %v800_v29 = vld [vmem:[#allocation8 + $0x4d8] sm:$0xff]  ;;  %v1706_v15 = vpack.c.bf16 %v802_v7, %v798_v6  ;;  %v799_v37 = vld [vmem:[#allocation8 + $0x4d0] sm:$0xff]  ;;  %v818_v8 = vld [vmem:[#allocation8 + $0x568] sm:$0xff]  ;;  %v2662_v6 = vrot.slane %v2545_v42, %v2647_v50 }
  0xdc   : > { %1689 = vmatpush1.bf16.msra.mxu0 %v1688_v44  ;;  %v509_v39 = vadd.f32 %v501_v53, %v438_v16  ;;  %v781_v44 = vld [vmem:[#allocation8 + $0x440] sm:$0xff]  ;;  %v803_v17 = vld [vmem:[#allocation8 + $0x4f0] sm:$0xff]  ;;  %v816_v32 = vld [vmem:[#allocation8 + $0x558] sm:$0xff] }
  0xdd   : > { %1817 = vmatpush1.bf16.msra.mxu1 %v1816_v51  ;;  %1691 = vmatprep.subr.bf16.mxu0 %v1690_v62  ;;  %v634_v49 = vadd.f32 %v2598_v13, %v605_v33  ;;  %v790_v51 = vld [vmem:[#allocation8 + $0x488] sm:$0xff]  ;;  %v1700_v60 = vpack.c.bf16 %v785_v45, %v781_v44  ;;  %v789_v13 = vld [vmem:[#allocation8 + $0x480] sm:$0xff]  ;;  %v1836_v21 = vpack.c.bf16 %v803_v17, %v799_v37  ;;  %v807_v30 = vld [vmem:[#allocation8 + $0x510] sm:$0xff] }
  0xde   : > { %1819 = vmatprep.subr.bf16.mxu1 %v1818_v5  ;;  %v573_v59 = vadd.f32 %v565_v34, %v509_v39  ;;  %v1702_v0 = vpack.c.bf16 %v794_v54, %v790_v51  ;;  %v795_v5 = vld [vmem:[#allocation8 + $0x4b0] sm:$0xff]  ;;  %v820_v33 = vld [vmem:[#allocation8 + $0x578] sm:$0xff]  ;;  %v821_v55 = vld [vmem:[#allocation8 + $0x580] sm:$0xff] }
  0xdf   : > { %v642_v56 = vmax.f32 %v634_v49, 0.0  ;;  %v1832_v12 = vpack.c.bf16 %v795_v5, %v791_v35  ;;  %v811_v53 = vld [vmem:[#allocation8 + $0x530] sm:$0xff]  ;;  %v1842_v45 = vpack.c.bf16 %v820_v33, %v816_v32  ;;  %v822_v49 = vld [vmem:[#allocation8 + $0x588] sm:$0xff]  ;;  %v824_v51 = vld [vmem:[#allocation8 + $0x598] sm:$0xff]  ;;  %v2654_v5 = vrot.slane %v2527_v28, %v2647_v50 }
  0xe0   : > { %1693 = vmatpush1.bf16.msra.mxu0 %v1692_v10  ;;  %v604_v62 = vmul.f32 %v2612_v40, %v573_v59  ;;  %v804_v10 = vld [vmem:[#allocation8 + $0x4f8] sm:$0xff]  ;;  %v1704_v40 = vpack.c.bf16 %v793_v3, %v789_v13  ;;  %v815_v44 = vld [vmem:[#allocation8 + $0x550] sm:$0xff]  ;;  %v2650_v59 = vsub.s32 3, %v2505_v61  ;;  %v830_v3 = vld [vmem:[#allocation8 + $0x5c8] sm:$0xff]  ;;  %v2658_v61 = vrot.slane %v2535_v36, %v2647_v50 }
  0xe1   : > { %1821 = vmatpush1.bf16.msra.mxu1 %v1820_v27  ;;  %1695 = vmatprep.subr.bf16.mxu0 %v1694_v47  ;;  %v801_v27 = vld [vmem:[#allocation8 + $0x4e0] sm:$0xff]  ;;  %v1834_v16 = vpack.c.bf16 %v804_v10, %v800_v29  ;;  %v806_v47 = vld [vmem:[#allocation8 + $0x508] sm:$0xff]  ;;  %v828_v54 = vld [vmem:[#allocation8 + $0x5b8] sm:$0xff] }
  0xe2   : > { %1823 = vmatprep.subr.bf16.mxu1 %v1822_v25  ;;  %v633_v23 = vadd.f32 %v2619_v57, %v604_v62  ;;  %v808_v57 = vld [vmem:[#allocation8 + $0x518] sm:$0xff]  ;;  %v1708_v20 = vpack.c.bf16 %v801_v27, %v797_v41  ;;  %v1710_v22 = vpack.c.bf16 %v810_v18, %v806_v47  ;;  %v805_v25 = vld [vmem:[#allocation8 + $0x500] sm:$0xff]  ;;  %v1846_v13 = vpack.c.bf16 %v828_v54, %v824_v51  ;;  %v834_v35 = vld [vmem:[#allocation8 + $0x5e8] sm:$0xff] }
  0xe3   : > { %988 = vmatmul.mubr.f32.vlgmr.msra.gmra.mrb[0].mxu0 %v637_v31  ;;  %v1838_v48 = vpack.c.bf16 %v812_v19, %v808_v57  ;;  %v1712_v34 = vpack.c.bf16 %v809_v26, %v805_v25  ;;  %v825_v62 = vld [vmem:[#allocation8 + $0x5a0] sm:$0xff]  ;;  %v836_v7 = vld [vmem:[#allocation8 + $0x5f8] sm:$0xff]  ;;  %v2666_v10 = vrot.slane %v2527_v28, %v2650_v59  ;;  %v2674_v41 = vrot.slane %v2535_v36, %v2650_v59  ;;  %v842_v19 = vld [vmem:[#allocation8 + $0x628] sm:$0xff] }
  0xe4   : > { %1697 = vmatpush1.bf16.msra.mxu0 %v1696_v38  ;;  %1142 = vmatmul.mubr.f32.vlgmr.msra.gmra.mrb[0].mxu1 %v637_v31  ;;  %v641_v11 = vmax.f32 %v633_v23, 0.0  ;;  %v814_v31 = vld [vmem:[#allocation8 + $0x548] sm:$0xff]  ;;  %v1840_v38 = vpack.c.bf16 %v811_v53, %v807_v30  ;;  %v829_v23 = vld [vmem:[#allocation8 + $0x5c0] sm:$0xff]  ;;  %v2678_v27 = vrot.slane %v2545_v42, %v2650_v59  ;;  %v1722_v37 = vpack.c.bf16 %v834_v35, %v830_v3  ;;  %v840_v25 = vld [vmem:[#allocation8 + $0x618] sm:$0xff] }
  0xe5   : > { %1825 = vmatpush1.bf16.msra.mxu1 %v1824_v52  ;;  %1699 = vmatprep.subr.bf16.mxu0 %v1698_v1  ;;  %v1714_v39 = vpack.c.bf16 %v818_v8, %v814_v31  ;;  %v813_v52 = vld [vmem:[#allocation8 + $0x540] sm:$0xff]  ;;  %v2688_v18 = vrot.slane %v2550_v43, %v2650_v59  ;;  %v844_v26 = vld [vmem:[#allocation8 + $0x638] sm:$0xff]  ;;  %v850_v51 = vld [vmem:[#allocation8 + $0x668] sm:$0xff] }
  0xe6   : > { %1827 = vmatprep.subr.bf16.mxu1 %v1826_v2  ;;  %993 = vmatprep.mubr.f32.mxu0 %v642_v56  ;;  %v817_v1 = vld [vmem:[#allocation8 + $0x560] sm:$0xff]  ;;  %v826_v2 = vld [vmem:[#allocation8 + $0x5a8] sm:$0xff] }
  0xe7   : > { %1147 = vmatprep.mubr.f32.mxu1 %v642_v56  ;;  %994 = vmatmul.mubr.f32.gmra.mrb[2].mxu0 %v641_v11  ;;  %v1716_v9 = vpack.c.bf16 %v817_v1, %v813_v52  ;;  %v1844_v56 = vpack.c.bf16 %v819_v46, %v815_v44  ;;  %v833_v29 = vld [vmem:[#allocation8 + $0x5e0] sm:$0xff]  ;;  %v839_v52 = vld [vmem:[#allocation8 + $0x610] sm:$0xff] }
  0xe8   : > { %1701 = vmatpush1.bf16.msra.mxu0 %v1700_v60  ;;  %1148 = vmatmul.mubr.f32.gmra.mrb[2].mxu1 %v641_v11  ;;  %v1718_v60 = vpack.c.bf16 %v826_v2, %v822_v49  ;;  %v1720_v11 = vpack.c.bf16 %v825_v62, %v821_v55  ;;  %v2681_v17 = vld [vmem:[%s2491_s27 + $0x18] sm:$0xff]  ;;  %v1724_v57 = vpack.c.bf16 %v833_v29, %v829_v23  ;;  %v843_v1 = vld [vmem:[#allocation8 + $0x630] sm:$0xff]  ;;  %v852_v62 = vld [vmem:[#allocation8 + $0x678] sm:$0xff] }
  0xe9   : > { %1829 = vmatpush1.bf16.msra.mxu1 %v1828_v63  ;;  %1703 = vmatprep.subr.bf16.mxu0 %v1702_v0  ;;  %v823_v63 = vld [vmem:[#allocation8 + $0x590] sm:$0xff]  ;;  %v2684_v47 = vld [vmem:[%s2491_s27 + $0x38] sm:$0xff]  ;;  %v454_v42 = vrot.slane %v2681_v17, 7  ;;  %v437_v30 = vmul.f32 %v2666_v10, %v2681_v17  ;;  %v1854_v49 = vpack.c.bf16 %v844_v26, %v840_v25  ;;  %v1856_v3 = vpack.c.bf16 %v843_v1, %v839_v52  ;;  %v856_v26 = vld [vmem:[#allocation8 + $0x698] sm:$0xff] }
  0xea   : > { %1831 = vmatprep.subr.bf16.mxu1 %v1830_v4  ;;  %v827_v0 = vld [vmem:[#allocation8 + $0x5b0] sm:$0xff]  ;;  %v832_v4 = vld [vmem:[#allocation8 + $0x5d8] sm:$0xff]  ;;  %v837_v8 = vld [vmem:[#allocation8 + $0x600] sm:$0xff]  ;;  %v461_v1 = vrot.slane %v2684_v47, 7 }
  0xeb   : > { %v1848_v28 = vpack.c.bf16 %v827_v0, %v823_v63  ;;  %v1850_v36 = vpack.c.bf16 %v836_v7, %v832_v4  ;;  %v841_v32 = vld [vmem:[#allocation8 + $0x620] sm:$0xff]  ;;  %v474_v33 = vsel %vm450_vm0, 0.0, %v454_v42  ;;  %v846_v2 = vld [vmem:[#allocation8 + $0x648] sm:$0xff]  ;;  %v2719_v0 = vrot.slane %v2577_v58, %v2650_v59 }
  0xec   : > { %1705 = vmatpush1.bf16.msra.mxu0 %v1704_v40  ;;  %v2670_v40 = vrot.slane %v2550_v43, %v2647_v50  ;;  %v524_v43 = vrot.slane %v2684_v47, 1  ;;  %v500_v44 = vmul.f32 %v2674_v41, %v474_v33  ;;  %v845_v35 = vld [vmem:[#allocation8 + $0x640] sm:$0xff]  ;;  %v1730_v29 = vpack.c.bf16 %v850_v51, %v846_v2  ;;  %v868_v2 = vld [vmem:[#allocation8 + $0x6f8] sm:$0xff] }
  0xed   : > { %1833 = vmatpush1.bf16.msra.mxu1 %v1832_v12  ;;  %1707 = vmatprep.subr.bf16.mxu0 %v1706_v15  ;;  %v831_v12 = vld [vmem:[#allocation8 + $0x5d0] sm:$0xff]  ;;  %v853_v33 = vld [vmem:[#allocation8 + $0x680] sm:$0xff] }
  0xee   : > { %1835 = vmatprep.subr.bf16.mxu1 %v1834_v16  ;;  %v835_v15 = vld [vmem:[#allocation8 + $0x5f0] sm:$0xff]  ;;  %v838_v16 = vld [vmem:[#allocation8 + $0x608] sm:$0xff]  ;;  %v508_v63 = vadd.f32 %v500_v44, %v437_v30  ;;  %v860_v30 = vld [vmem:[#allocation8 + $0x6b8] sm:$0xff] }
  0xef   : > { %v1852_v31 = vpack.c.bf16 %v835_v15, %v831_v12  ;;  %v847_v12 = vld [vmem:[#allocation8 + $0x650] sm:$0xff] }
  0xf0   : > { %1709 = vmatpush1.bf16.msra.mxu0 %v1708_v20  ;;  %v523_v20 = vrot.slane %v2681_v17, 1  ;;  %v851_v15 = vld [vmem:[#allocation8 + $0x670] sm:$0xff] }
  0xf1   : > { %1837 = vmatpush1.bf16.msra.mxu1 %v1836_v21  ;;  %1711 = vmatprep.subr.bf16.mxu0 %v1710_v22  ;;  %v2693_v21 = vld [vmem:[%s2491_s27 + $0x10] sm:$0xff] }
  0xf2   : > { %1839 = vmatprep.subr.bf16.mxu1 %v1838_v48  ;;  %v2696_v22 = vld [vmem:[%s2491_s27 + $0x30] sm:$0xff]  ;;  %v453_v48 = vrot.slane %v2693_v21, 7  ;;  %v520_v53 = vrot.slane %v2693_v21, 1 }
  0xf3   : > { %v459_v7 = vrot.slane %v2696_v22, 7 }
  0xf4   : > { %1713 = vmatpush1.bf16.msra.mxu0 %v1712_v34  ;;  %v436_v34 = vmul.f32 %v2654_v5, %v2693_v21  ;;  %v473_v46 = vsel %vm450_vm0, 0.0, %v453_v48 }
  0xf5   : > { %1841 = vmatpush1.bf16.msra.mxu1 %v1840_v38  ;;  %1715 = vmatprep.subr.bf16.mxu0 %v1714_v39  ;;  %v521_v38 = vrot.slane %v2696_v22, 1  ;;  %v1726_v39 = vpack.c.bf16 %v842_v19, %v838_v16  ;;  %v620_v16 = vrot.slane %v2577_v58, %v2647_v50  ;;  %v858_v19 = vld [vmem:[#allocation8 + $0x6a8] sm:$0xff]  ;;  %v460_v25 = vsel %vm450_vm0, %v453_v48, %v459_v7  ;;  %v859_v48 = vld [vmem:[#allocation8 + $0x6b0] sm:$0xff] }
  0xf6   : > { %1843 = vmatprep.subr.bf16.mxu1 %v1842_v45  ;;  %v525_v45 = vsel %vm513_vm1, %v523_v20, %v524_v43  ;;  %v870_v7 = vld [vmem:[#allocation8 + $0x708] sm:$0xff] }
  0xf7   : > { %v564_v54 = vmul.f32 %v2678_v27, %v525_v45  ;;  %v522_v55 = vsel %vm513_vm1, %v520_v53, %v521_v38  ;;  %v536_v23 = vsel %vm513_vm1, %v521_v38, 0.0  ;;  %v857_v38 = vld [vmem:[#allocation8 + $0x6a0] sm:$0xff]  ;;  %v866_v45 = vld [vmem:[#allocation8 + $0x6e8] sm:$0xff] }
  0xf8   : > { %1717 = vmatpush1.bf16.msra.mxu0 %v1716_v9  ;;  %v499_v9 = vmul.f32 %v2658_v61, %v473_v46 }
  0xf9   : > { %1845 = vmatpush1.bf16.msra.mxu1 %v1844_v56  ;;  %1719 = vmatprep.subr.bf16.mxu0 %v1718_v60  ;;  %v1728_v56 = vpack.c.bf16 %v841_v32, %v837_v8  ;;  %v848_v60 = vld [vmem:[#allocation8 + $0x658] sm:$0xff]  ;;  %v567_v8 = vmul.f32 %v2662_v6, %v536_v23  ;;  %v1860_v32 = vpack.c.bf16 %v851_v15, %v847_v12  ;;  %v874_v23 = vld [vmem:[#allocation8 + $0x728] sm:$0xff] }
  0xfa   : > { %1847 = vmatprep.subr.bf16.mxu1 %v1846_v13  ;;  %v563_v13 = vmul.f32 %v2662_v6, %v522_v55  ;;  %v507_v4 = vadd.f32 %v499_v9, %v436_v34  ;;  %v862_v6 = vld [vmem:[#allocation8 + $0x6c8] sm:$0xff]  ;;  %v1736_v9 = vpack.c.bf16 %v857_v38, %v853_v33  ;;  %v877_v33 = vld [vmem:[#allocation8 + $0x740] sm:$0xff]  ;;  %v883_v38 = vld [vmem:[#allocation8 + $0x770] sm:$0xff] }
  0xfc   : > { %1721 = vmatpush1.bf16.msra.mxu0 %v1720_v11  ;;  %v849_v11 = vld [vmem:[#allocation8 + $0x660] sm:$0xff]  ;;  %v571_v20 = vadd.f32 %v563_v13, %v507_v4  ;;  %v462_v13 = vsel %vm450_vm0, %v454_v42, %v461_v1  ;;  %v867_v4 = vld [vmem:[#allocation8 + $0x6f0] sm:$0xff]  ;;  %v892_v1 = vld [vmem:[#allocation8 + $0x7b8] sm:$0xff] }
  0xfd   : > { %1849 = vmatpush1.bf16.msra.mxu1 %v1848_v28  ;;  %1723 = vmatprep.subr.bf16.mxu0 %v1722_v37  ;;  %v572_v28 = vadd.f32 %v564_v54, %v508_v63  ;;  %v440_v37 = vmul.f32 %v2654_v5, %v2696_v22  ;;  %v1732_v5 = vpack.c.bf16 %v849_v11, %v845_v35  ;;  %v863_v63 = vld [vmem:[#allocation8 + $0x6d0] sm:$0xff]  ;;  %v876_v11 = vld [vmem:[#allocation8 + $0x738] sm:$0xff] }
  0xfe   : > { %1851 = vmatprep.subr.bf16.mxu1 %v1850_v36  ;;  %v1858_v36 = vpack.c.bf16 %v852_v62, %v848_v60  ;;  %v602_v58 = vmul.f32 %v2670_v40, %v571_v20  ;;  %v861_v60 = vld [vmem:[#allocation8 + $0x6c0] sm:$0xff]  ;;  %v504_v42 = vmul.f32 %v2674_v41, %v462_v13  ;;  %v537_v20 = vsel %vm513_vm1, %v524_v43, 0.0 }
  0xff   : > { %v603_v53 = vmul.f32 %v2688_v18, %v572_v28  ;;  %v865_v62 = vld [vmem:[#allocation8 + $0x6e0] sm:$0xff]  ;;  %v441_v28 = vmul.f32 %v2666_v10, %v2684_v47  ;;  %v884_v10 = vld [vmem:[#allocation8 + $0x778] sm:$0xff] }
 0x100   : > { %1725 = vmatpush1.bf16.msra.mxu0 %v1724_v57  ;;  %v854_v57 = vld [vmem:[#allocation8 + $0x688] sm:$0xff]  ;;  %v2735_v46 = vadd.f32 %v620_v16, %v602_v58  ;;  %v1740_v15 = vpack.c.bf16 %v865_v62, %v861_v60  ;;  %v881_v58 = vld [vmem:[#allocation8 + $0x760] sm:$0xff]  ;;  %v900_v60 = vld [vmem:[#allocation8 + $0x7f8] sm:$0xff] }
 0x101   : > { %1853 = vmatpush1.bf16.msra.mxu1 %v1852_v31  ;;  %1727 = vmatprep.subr.bf16.mxu0 %v1726_v39  ;;  %v503_v31 = vmul.f32 %v2658_v61, %v460_v25  ;;  %v1734_v34 = vpack.c.bf16 %v858_v19, %v854_v57  ;;  %v855_v39 = vld [vmem:[#allocation8 + $0x690] sm:$0xff]  ;;  %v632_v52 = vadd.f32 %v2719_v0, %v603_v53  ;;  %v873_v57 = vld [vmem:[#allocation8 + $0x720] sm:$0xff]  ;;  %v880_v53 = vld [vmem:[#allocation8 + $0x758] sm:$0xff] }
 0x102   : > { %1855 = vmatprep.subr.bf16.mxu1 %v1854_v49  ;;  %v1862_v61 = vpack.c.bf16 %v860_v30, %v856_v26  ;;  %v864_v49 = vld [vmem:[#allocation8 + $0x6d8] sm:$0xff]  ;;  %v1864_v55 = vpack.c.bf16 %v859_v48, %v855_v39  ;;  %v871_v19 = vld [vmem:[#allocation8 + $0x710] sm:$0xff]  ;;  %v878_v26 = vld [vmem:[#allocation8 + $0x748] sm:$0xff]  ;;  %v1874_v43 = vpack.c.bf16 %v884_v10, %v880_v53 }
 0x103   : > { %v511_v44 = vadd.f32 %v503_v31, %v440_v37  ;;  %v640_v51 = vmax.f32 %v632_v52, 0.0  ;;  %v1866_v35 = vpack.c.bf16 %v868_v2, %v864_v49  ;;  %v1742_v37 = vpack.c.bf16 %v874_v23, %v870_v7  ;;  %v875_v25 = vld [vmem:[#allocation8 + $0x730] sm:$0xff]  ;;  %v882_v30 = vld [vmem:[#allocation8 + $0x768] sm:$0xff]  ;;  %v888_v52 = vld [vmem:[#allocation8 + $0x798] sm:$0xff] }
 0x104   : > { %1729 = vmatpush1.bf16.msra.mxu0 %v1728_v56  ;;  %v1738_v56 = vpack.c.bf16 %v866_v45, %v862_v6  ;;  %v512_v31 = vadd.f32 %v504_v42, %v441_v28  ;;  %v886_v39 = vld [vmem:[#allocation8 + $0x788] sm:$0xff]  ;;  %v885_v45 = vld [vmem:[#allocation8 + $0x780] sm:$0xff]  ;;  %v887_v2 = vld [vmem:[#allocation8 + $0x790] sm:$0xff] }
 0x105   : > { %1857 = vmatpush1.bf16.msra.mxu1 %v1856_v3  ;;  %1731 = vmatprep.subr.bf16.mxu0 %v1730_v29  ;;  %v575_v54 = vadd.f32 %v567_v8, %v511_v44  ;;  %v872_v29 = vld [vmem:[#allocation8 + $0x718] sm:$0xff]  ;;  %v568_v8 = vmul.f32 %v2678_v27, %v537_v20  ;;  %v890_v48 = vld [vmem:[#allocation8 + $0x7a8] sm:$0xff]  ;;  %v1748_v44 = vpack.c.bf16 %v881_v58, %v877_v33  ;;  %v889_v49 = vld [vmem:[#allocation8 + $0x7a0] sm:$0xff] }
 0x106   : > { %1859 = vmatprep.subr.bf16.mxu1 %v1858_v36  ;;  %1064 = vmatprep.mubr.f32.mxu0 %v640_v51  ;;  %v869_v36 = vld [vmem:[#allocation8 + $0x700] sm:$0xff]  ;;  %v1750_v6 = vpack.c.bf16 %v890_v48, %v886_v39  ;;  %v1752_v62 = vpack.c.bf16 %v889_v49, %v885_v45  ;;  %v895_v23 = vld [vmem:[#allocation8 + $0x7d0] sm:$0xff]  ;;  %v2787_v10 = vld [vmem:[%s2990_s8] sm:$0xf] }
 0x107   : > { %v606_v3 = vmul.f32 %v2670_v40, %v575_v54  ;;  %1218 = vmatprep.mubr.f32.mxu1 %v640_v51  ;;  %v1868_v40 = vpack.c.bf16 %v867_v4, %v863_v63  ;;  %v1744_v41 = vpack.c.bf16 %v873_v57, %v869_v36  ;;  %v1878_v51 = vpack.c.bf16 %v892_v1, %v888_v52  ;;  %v891_v54 = vld [vmem:[#allocation8 + $0x7b0] sm:$0xff]  ;;  %v897_v4 = vld [vmem:[#allocation8 + $0x7e0] sm:$0xff] }
 0x108   : > { %1733 = vmatpush1.bf16.msra.mxu0 %v1732_v5  ;;  %v1872_v5 = vpack.c.bf16 %v875_v25, %v871_v19  ;;  %v1880_v13 = vpack.c.bf16 %v891_v54, %v887_v2  ;;  %v1622_v20 = vld [vmem:[%s2988_s6 + $0x2] ss:$4 sm:$0xf]  ;;  %v2820_v45 = vrot.slane %v2787_v10, %v2647_v50 }
 0x109   : > { %1861 = vmatpush1.bf16.msra.mxu1 %v1860_v32  ;;  %1735 = vmatprep.subr.bf16.mxu0 %v1734_v34  ;;  %v2741_v12 = vadd.f32 %v620_v16, %v606_v3  ;;  %v1870_v16 = vpack.c.bf16 %v876_v11, %v872_v29  ;;  %v1746_v32 = vpack.c.bf16 %v882_v30, %v878_v26  ;;  %v879_v34 = vld [vmem:[#allocation8 + $0x750] sm:$0xff] }
 0x10a   : > { %1863 = vmatprep.subr.bf16.mxu1 %v1862_v61  ;;  %v576_v61 = vadd.f32 %v568_v8, %v512_v31  ;;  %v1876_v27 = vpack.c.bf16 %v883_v38, %v879_v34  ;;  %v899_v29 = vld [vmem:[#allocation8 + $0x7f0] sm:$0xff]  ;;  %v2808_v39 = vrot.slane %v1622_v20, %v2647_v50  ;;  %v2823_v49 = vrot.slane %v1622_v20, %v2508_v14 }
 0x10b   : > { %v1884_v28 = vpack.c.bf16 %v899_v29, %v895_v23 }
 0x10c   : > { %1737 = vmatpush1.bf16.msra.mxu0 %v1736_v9  ;;  %v894_v9 = vld [vmem:[#allocation8 + $0x7c8] sm:$0xff]  ;;  %v607_v63 = vmul.f32 %v2688_v18, %v576_v61  ;;  %v639_v18 = vmax.f32 %v2735_v46, 0.0 }
 0x10d   : > { %1865 = vmatpush1.bf16.msra.mxu1 %v1864_v55  ;;  %1739 = vmatprep.subr.bf16.mxu0 %v1738_v56  ;;  %v898_v55 = vld [vmem:[#allocation8 + $0x7e8] sm:$0xff]  ;;  %v896_v56 = vld [vmem:[#allocation8 + $0x7d8] sm:$0xff] }
 0x10e   : > { %1867 = vmatprep.subr.bf16.mxu1 %v1866_v35  ;;  %v1754_v3 = vpack.c.bf16 %v898_v55, %v894_v9  ;;  %v893_v35 = vld [vmem:[#allocation8 + $0x7c0] sm:$0xff]  ;;  %v1882_v7 = vpack.c.bf16 %v900_v60, %v896_v56  ;;  %v1302_v46 = vld [vmem:[%s2988_s6] ss:$4 sm:$0xf]  ;;  %v2831_v9 = vrot.slane %v1622_v20, %v2650_v59 }
 0x10f   : > { %v1756_v11 = vpack.c.bf16 %v897_v4, %v893_v35  ;;  %v2790_v31 = vrot.slane %v1302_v46, %v2518_v24  ;;  %v2793_v8 = vrot.slane %v1302_v46, %v2647_v50 }
 0x110   : > { %1741 = vmatpush1.bf16.msra.mxu0 %v1740_v15  ;;  %v636_v15 = vadd.f32 %v2719_v0, %v607_v63  ;;  %v1621_v0 = vld [vmem:[%s2988_s6 + $0x1] ss:$4 sm:$0xf] }
 0x111   : > { %1869 = vmatpush1.bf16.msra.mxu1 %v1868_v40  ;;  %1743 = vmatprep.subr.bf16.mxu0 %v1742_v37  ;;  %v643_v40 = vmax.f32 %v2741_v12, 0.0  ;;  %v901_v37 = vld [vmem:[#allocation10] sm:$0xf]  ;;  %v2773_v25 = vrot.slane %v1621_v0, %v2518_v24  ;;  %v2776_v26 = vrot.slane %v1621_v0, %v2647_v50  ;;  %v2779_v30 = vrot.slane %v1621_v0, %v2508_v14 }
 0x112   : > { %1871 = vmatprep.subr.bf16.mxu1 %v1870_v16  ;;  %v644_v42 = vmax.f32 %v636_v15, 0.0  ;;  %v906_v36 = vrot.slane %v901_v37, %v2518_v24  ;;  %v914_v57 = vrot.slane %v901_v37, %v2647_v50  ;;  %v910_v12 = vrot.slane %v901_v37, %v2508_v14  ;;  %v1403_v16 = vld [vmem:[%s2989_s7] sm:$0xf] }
 0x113   : > { %v2764_v19 = vrot.slane %v901_v37, %v2650_v59  ;;  %v2782_v53 = vrot.slane %v1621_v0, %v2650_v59  ;;  %v2805_v38 = vrot.slane %v1403_v16, %v2518_v24  ;;  %v2815_v61 = vrot.slane %v1403_v16, %v2647_v50 }
 0x114   : > { %1745 = vmatpush1.bf16.msra.mxu0 %v1744_v41  ;;  %v2837_v50 = vrot.slane %v2787_v10, %v2508_v14  ;;  %v2840_v63 = vrot.slane %v1403_v16, %v2650_v59 }
 0x115   : > { %1873 = vmatpush1.bf16.msra.mxu1 %v1872_v5  ;;  %1747 = vmatprep.subr.bf16.mxu0 %v1746_v32  ;;  %v2796_v5 = vrot.slane %v1302_v46, %v2508_v14  ;;  %v2799_v32 = vrot.slane %v1302_v46, %v2650_v59 }
 0x116   : > { %1875 = vmatprep.subr.bf16.mxu1 %v1874_v43  ;;  %v2802_v43 = vrot.slane %v1622_v20, %v2518_v24 }
 0x118   : > { %1749 = vmatpush1.bf16.msra.mxu0 %v1748_v44  ;;  %v2812_v44 = vrot.slane %v2787_v10, %v2518_v24  ;;  %v2828_v24 = vrot.slane %v1403_v16, %v2508_v14 }
 0x119   : > { %1877 = vmatpush1.bf16.msra.mxu1 %v1876_v27  ;;  %1751 = vmatprep.subr.bf16.mxu0 %v1750_v6 }
 0x11a   : > { %1879 = vmatprep.subr.bf16.mxu1 %v1878_v51 }
 0x11c   : > { %1753 = vmatpush1.bf16.msra.mxu0 %v1752_v62 }
 0x11d   : > { %1881 = vmatpush1.bf16.msra.mxu1 %v1880_v13  ;;  %1755 = vmatprep.subr.bf16.mxu0 %v1754_v3 }
 0x11e   : > { %1883 = vmatprep.subr.bf16.mxu1 %v1882_v7 }
 0x120   : > { %1757 = vmatpush1.bf16.msra.mxu0 %v1756_v11 }
 0x121   : > { %1885 = vmatpush1.bf16.msra.mxu1 %v1884_v28 }
 0x123   : > { %1065 = vmatmul.mubr.f32.vlgmr.msra.gmra.mrb[0].mxu0 %v639_v18 }
 0x124   : > { %1219 = vmatmul.mubr.f32.vlgmr.msra.gmra.mrb[0].mxu1 %v639_v18  ;;  %1070 = vmatprep.mubr.f32.mxu0 %v644_v42 }
 0x125   : > { %1224 = vmatprep.mubr.f32.mxu1 %v644_v42 }
 0x127   : > { %1071 = vmatmul.mubr.f32.gmra.mrb[2].mxu0 %v643_v40 }
 0x128   : > { %1225 = vmatmul.mubr.f32.gmra.mrb[2].mxu1 %v643_v40 }
 0x1f6   : > { %v1066_v41 = vpop.f32.mrb[0].mxu0 }
 0x1f7   : > { %v1886_v33 = vadd.f32 %v1066_v41, %v906_v36  ;;  %v1220_v58 = vpop.f32.mrb[0].mxu1  ;;  %v1068_v34 = vpop.f32.mrb[1].mxu0 }
 0x1f8   : > { %v1890_v48 = vadd.f32 %v1220_v58, %v914_v57  ;;  %v1887_v52 = vadd.f32 %v1068_v34, %v910_v12  ;;  %v1222_v1 = vpop.f32.mrb[1].mxu1 }
 0x1f9   : > { %v1231_v27 = vmax.f32 %v1886_v33, 0.0  ;;  %v1891_v6 = vadd.f32 %v1222_v1, %v2764_v19 }
 0x1fa   : > { %v1233_v2 = vmax.f32 %v1890_v48, 0.0  ;;  %v2825_v51 = vmax.f32 %v1887_v52, 0.0  ;;  %v1072_v54 = vpop.f32.mrb[2].mxu0 }
 0x1fb   : > { %v1278_v55 = vrot.slane %v1231_v27, 7  ;;  %v2833_v56 = vmax.f32 %v1891_v6, 0.0  ;;  %v1226_v60 = vpop.f32.mrb[2].mxu1  ;;  %v1074_v62 = vpop.f32.mrb[3].mxu0  ;;  %v1262_v13 = vmul.f32 %v2773_v25, %v1231_v27  ;;  %v1340_v3 = vrot.slane %v1231_v27, 1 }
 0x1fc   : > { %v1264_v35 = vmul.f32 %v2776_v26, %v1233_v2  ;;  %v1280_v4 = vrot.slane %v1233_v2, 7  ;;  %v1228_v7 = vpop.f32.mrb[3].mxu1  ;;  %v1346_v29 = vrot.slane %v1233_v2, 1  ;;  %v1263_v11 = vmul.f32 %v2779_v30, %v2825_v51 }
 0x1fd   : > { %v1298_v23 = vsel %vm450_vm0, 0.0, %v1278_v55  ;;  %v1279_v15 = vrot.slane %v2825_v51, 7  ;;  %v1343_v18 = vrot.slane %v2825_v51, 1  ;;  %v1281_v42 = vrot.slane %v2833_v56, 7 }
 0x1fe   : > { %v1324_v14 = vmul.f32 %v2790_v31, %v1298_v23  ;;  %v1300_v28 = vsel %vm450_vm0, 0.0, %v1280_v4  ;;  %v1888_v0 = vadd.f32 %v1072_v54, %v906_v36  ;;  %v1892_v46 = vadd.f32 %v1226_v60, %v914_v57 }
 0x1ff   : > { %v1326_v40 = vmul.f32 %v2793_v8, %v1300_v28  ;;  %v1299_v37 = vsel %vm450_vm0, 0.0, %v1279_v15  ;;  %v1265_v16 = vmul.f32 %v2782_v53, %v2833_v56  ;;  %v1301_v41 = vsel %vm450_vm0, 0.0, %v1281_v42 }
 0x200   : > { %v1325_v20 = vmul.f32 %v2796_v5, %v1299_v37  ;;  %v1889_v33 = vadd.f32 %v1074_v62, %v910_v12  ;;  %v1332_v58 = vadd.f32 %v1324_v14, %v1262_v13  ;;  %v1349_v34 = vrot.slane %v2833_v56, 1  ;;  %v1995_v56 = vld [vmem:[%s2491_s27 + $0x8] sm:$0xff] }
 0x201   : > { %v1235_v48 = vmax.f32 %v1888_v0, 0.0  ;;  %v1237_v52 = vmax.f32 %v1892_v46, 0.0  ;;  %v1334_v1 = vadd.f32 %v1326_v40, %v1264_v35  ;;  %v1327_v36 = vmul.f32 %v2799_v32, %v1301_v41 }
 0x202   : > { %v1333_v27 = vadd.f32 %v1325_v20, %v1263_v11  ;;  %v1236_v57 = vmax.f32 %v1889_v33, 0.0  ;;  %v1893_v54 = vadd.f32 %v1228_v7, %v2764_v19 }
 0x203   : > { %v1266_v6 = vmul.f32 %v2773_v25, %v1235_v48  ;;  %v1282_v2 = vrot.slane %v1235_v48, 7  ;;  %v1341_v51 = vrot.slane %v1235_v48, 1  ;;  %v1268_v60 = vmul.f32 %v2776_v26, %v1237_v52 }
 0x204   : > { %v1286_v23 = vrot.slane %v1237_v52, 7  ;;  %v1347_v12 = vrot.slane %v1237_v52, 1  ;;  %v1267_v62 = vmul.f32 %v2779_v30, %v1236_v57  ;;  %v1284_v14 = vrot.slane %v1236_v57, 7 }
 0x205   : > { %v1283_v13 = vsel %vm450_vm0, %v1278_v55, %v1282_v2  ;;  %v1342_v35 = vsel %vm513_vm1, %v1340_v3, %v1341_v51  ;;  %v1360_v11 = vsel %vm513_vm1, %v1341_v51, 0.0  ;;  %v1238_v41 = vmax.f32 %v1893_v54, 0.0  ;;  %v1993_v51 = vld [vmem:[%s2491_s27] sm:$0xff] }
 0x206   : > { %v1328_v28 = vmul.f32 %v2790_v31, %v1283_v13  ;;  %v1387_v25 = vmul.f32 %v2802_v43, %v1342_v35  ;;  %v1391_v40 = vmul.f32 %v2802_v43, %v1360_v11  ;;  %v1287_v19 = vsel %vm450_vm0, %v1280_v4, %v1286_v23  ;;  %v1994_v13 = vld [vmem:[%s2491_s27 + $0x20] sm:$0xff] }
 0x207   : > { %v1330_v26 = vmul.f32 %v2793_v8, %v1287_v19  ;;  %v1348_v7 = vsel %vm513_vm1, %v1346_v29, %v1347_v12  ;;  %v1362_v30 = vsel %vm513_vm1, %v1347_v12, 0.0  ;;  %v1285_v55 = vsel %vm450_vm0, %v1279_v15, %v1284_v14  ;;  %v1996_v19 = vld [vmem:[%s2491_s27 + $0x28] sm:$0xff]  ;;  %s2139_s27 = scalar_lea.vmem %s2934_s16, 1024 }
 0x208   : > { %v1336_v3 = vadd.f32 %v1328_v28, %v1266_v6  ;;  %v1395_v37 = vadd.f32 %v1387_v25, %v1332_v58  ;;  %v1389_v0 = vmul.f32 %v2808_v39, %v1348_v7  ;;  %v1393_v31 = vmul.f32 %v2808_v39, %v1362_v30  ;;  %p2140_p4 = scmp.ne.s32.totalorder %s2934_s16, %s2139_s27  ;;  %p2147_p7 = scmp.lt.s32.totalorder %s2145_s19, %s2139_s27 }
 0x209   : > { %v1338_v46 = vadd.f32 %v1330_v26, %v1268_v60  ;;  %v1329_v20 = vmul.f32 %v2796_v5, %v1285_v55  ;;  %v1344_v43 = vrot.slane %v1236_v57, 1  ;;  %v1335_v4 = vadd.f32 %v1327_v36, %v1265_v16 }
 0x20a   : > { %v1399_v33 = vadd.f32 %v1391_v40, %v1336_v3  ;;  %v1426_v8 = vmul.f32 %v2805_v38, %v1395_v37  ;;  %v1397_v29 = vadd.f32 %v1389_v0, %v1334_v1  ;;  %v1269_v57 = vmul.f32 %v2782_v53, %v1238_v41  ;;  %p2141_p6 = pnand %p2140_p4, %p2430_p1  ;;  %p2148_p10 = por %p2147_p7, %p2146_p3 }
 0x20b   : > { %v1401_v48 = vadd.f32 %v1393_v31, %v1338_v46  ;;  %v1337_v52 = vadd.f32 %v1329_v20, %v1267_v62  ;;  %v1345_v15 = vsel %vm513_vm1, %v1343_v18, %v1344_v43  ;;  %v1361_v58 = vsel %vm513_vm1, %v1344_v43, 0.0 }
 0x20c   : > { %v1430_v6 = vmul.f32 %v2805_v38, %v1399_v33  ;;  %v1455_v39 = vadd.f32 %v2812_v44, %v1426_v8  ;;  %v1428_v5 = vmul.f32 %v2815_v61, %v1397_v29  ;;  %v1388_v16 = vmul.f32 %v2823_v49, %v1345_v15  ;;  %p2142_p8 = pneg %p2141_p6 }
 0x20d   : > { %v1432_v36 = vmul.f32 %v2815_v61, %v1401_v48  ;;  %v1392_v1 = vmul.f32 %v2823_v49, %v1361_v58  ;;  %v1288_v2 = vrot.slane %v1238_v41, 7  ;;  %v1350_v61 = vrot.slane %v1238_v41, 1 }
 0x20e   : > { %v1459_v18 = vadd.f32 %v2812_v44, %v1430_v6  ;;  %v1463_v54 = vadd.f32 %v1993_v51, %v1455_v39  ;;  %v1457_v38 = vadd.f32 %v2820_v45, %v1428_v5  ;;  %v1396_v60 = vadd.f32 %v1388_v16, %v1333_v27  ;;  %p2149_p13 = pnand %p2148_p10, %p2142_p8 }
 0x20f   : > { %v1461_v23 = vadd.f32 %v2820_v45, %v1432_v36  ;;  %v1400_v12 = vadd.f32 %v1392_v1, %v1337_v52  ;;  %v1289_v62 = vsel %vm450_vm0, %v1281_v42, %v1288_v2  ;;  %v1351_v35 = vsel %vm513_vm1, %v1349_v34, %v1350_v61 }
 0x210   : > { %v1467_v49 = vadd.f32 %v1994_v13, %v1459_v18  ;;  %1471 = vst [vmem:[%s2900_s17] sm:$0xff] %v1463_v54  ;;  %v1465_v53 = vadd.f32 %v1457_v38, %v2693_v21  ;;  %v1427_v44 = vmul.f32 %v2828_v24, %v1396_v60  ;;  %v1331_v45 = vmul.f32 %v2799_v32, %v1289_v62 }
 0x211   : > { %v1469_v42 = vadd.f32 %v1461_v23, %v2696_v22  ;;  %v1431_v27 = vmul.f32 %v2828_v24, %v1400_v12  ;;  %v1363_v11 = vsel %vm513_vm1, %v1350_v61, 0.0  ;;  %v1390_v32 = vmul.f32 %v2831_v9, %v1351_v35 }
 0x212   : > { %1475 = vst [vmem:[%s2900_s17 + $0x20] sm:$0xff] %v1467_v49  ;;  %1473 = vst [vmem:[%s2900_s17 + $0x10] sm:$0xff] %v1465_v53  ;;  %v1456_v21 = vadd.f32 %v2837_v50, %v1427_v44  ;;  %v1339_v14 = vadd.f32 %v1331_v45, %v1269_v57  ;;  %v1394_v22 = vmul.f32 %v2831_v9, %v1363_v11 }
 0x213   : > { %1477 = vst [vmem:[%s2900_s17 + $0x30] sm:$0xff] %v1469_v42  ;;  %v1460_v24 = vadd.f32 %v2837_v50, %v1431_v27  ;;  %v1398_v28 = vadd.f32 %v1390_v32, %v1335_v4  ;;  %v1450_v40 = vrot.slane %v2787_v10, %v2650_v59 }
 0x214   : > { %v1464_v34 = vadd.f32 %v1995_v56, %v1456_v21  ;;  %v1402_v25 = vadd.f32 %v1394_v22, %v1339_v14 }
 0x215   : > { %v1468_v26 = vadd.f32 %v1996_v19, %v1460_v24  ;;  %v1429_v7 = vmul.f32 %v2840_v63, %v1398_v28 }
 0x216   : > { %1472 = vst [vmem:[%s2900_s17 + $0x8] sm:$0xff] %v1464_v34  ;;  %v1433_v9 = vmul.f32 %v2840_v63, %v1402_v25 }
 0x217   : > { %1476 = vst [vmem:[%s2900_s17 + $0x28] sm:$0xff] %v1468_v26  ;;  %v1458_v50 = vadd.f32 %v1450_v40, %v1429_v7 }
 0x218   : > { %v1462_v30 = vadd.f32 %v1450_v40, %v1433_v9 }
 0x219   : > { %v1466_v59 = vadd.f32 %v1458_v50, %v2681_v17 }
 0x21a   : > { %v1470_v10 = vadd.f32 %v1462_v30, %v2684_v47 }
 0x21b   : > { %1474 = vst [vmem:[%s2900_s17 + $0x18] sm:$0xff] %v1466_v59 }
 0x21c   : > { %1478 = vst [vmem:[%s2900_s17 + $0x38] sm:$0xff] %v1470_v10 }
 0x21d   : > { %2152 = shalt.err (!%p2149_p13)
}
 0x21e   : > { %s2153_s22 = scalar_lea.hbm %s2932_s25, 1024  ;;  %s2157_s17 = scalar_lea.hbm %s2991_s9, 2048 }
 0x21f   : > { %p2154_p0 = scmp.ne.s32.totalorder %s2932_s25, %s2153_s22  ;;  %p2158_p9 = scmp.lt.u32.totalorder %s2932_s25, %s2991_s9 }
 0x220   : > { %p2159_p12 = scmp.lt.u32.totalorder %s2157_s17, %s2153_s22  ;;  %p2161_p4 = scmp.lt.u32.totalorder %s2153_s22, %s2932_s25 }
 0x221   : > { %p2155_p5 = pnand %p2154_p0, %p2430_p1 }
 0x222   : > { %p2160_p2 = por %p2159_p12, %p2158_p9 }
 0x223   : > { %p2156_p11 = pneg %p2155_p5 }
 0x224   : > { %p2162_p6 = por %p2161_p4, %p2160_p2 }
 0x226   : > { %p2163_p8 = pnand %p2162_p6, %p2156_p11 }
 0x228   : > { %2166 = shalt.err (!%p2163_p8)
}
 0x229   : > { %s2223_s21 = smov 512   ;;  %s2224_s27 = smov 32  }
 0x22a   : > { %1920 = dma.vmem_to_hbm [thread:$0]  (%p2430_p1), %s2934_s16, 1024, %s2932_s25, %s1480_s13, %s2223_s21, %s2223_s21, %s2224_s27  }
 0x22b PF: > { %s3015_s20 = sld [smem:[#allocation16_spill]]  ;;  %s1508_s28 = sand.u32 1, %s2201_s30  }
 0x22c   : > { %p3017_p7 = scmp.ge.s32.totalorder %s2213_s12, 2  ;;  %s1509_s19 = scalar_lea.sflag [#allocation4], %s1508_s28 }
 0x231   : > { %p3016_p3 = scmp.ne.s32.totalorder %s3015_s20, 0 }
 0x233   : > { %p1940_p10 = pnand %p3017_p7, %p3016_p3 }
 0x235   : > { %2196 = dma.done.wait (!%p1940_p10), %s1509_s19, 1024  }
 0x236   : > { %2198 = vsyncadd (!%p1940_p10), %s1509_s19, 4294966272  ;;  %p24_p13 = scmp.ge.s32.totalorder %s2420_s14, 4   ;;  %s3018_s30 = smov %s2205_s10 }
 0x237   : > { %s3019_s10 = smov %s2209_s11  ;;  %s3020_s11 = smov %s2436_s29 }
 0x238   : > { %s3021_s12 = smov %s2420_s14  ;;  %26 = sbr.rel (!%p24_p13) target bundleno = 9 (0x9), region = 121 }
 0x23f   :  { %1514 = vsyncpa [#allocation3], 1 }
 0x240   :  { %1516 = vsyncpa [#allocation3 + $0x1], 1 }
 0x241   :  { %1517 = vsyncpa [#allocation6], 1 }
 0x242   :  { %1518 = vsyncpa [#allocation9], 1 }
 0x243   :  { %1519 = vsyncpa [#allocation4], 1 }
 0x244   :  { %1521 = vsyncpa [#allocation4 + $0x1], 1 }

</bundles_post_ra>
